<compile_context>
chip_gen: v7x
topology: tpu7x:2x2x1
jax: 0.10.0
libtpu: 0.0.40
codegen_flags: <defaults>
</compile_context>

<pallas_src>
import functools

import jax
import jax.numpy as jnp
from jax import lax
from jax.experimental import pallas as pl
from jax.experimental.pallas import tpu as pltpu


_LANE = 128
_FALLBACK_VMEM_BUDGET = 48 * 1024 * 1024   # safe on every generation


def _vmem_budget():
    """~75% of this generation's per-core VMEM (48 MiB v7x, 96 MiB v5e/v6e)."""
    try:
        cap = int(pltpu.get_tpu_info().vmem_capacity_bytes)
        return (cap * 3) // 4
    except Exception:
        return _FALLBACK_VMEM_BUDGET


def _max_tile_t(budget):
    return 64 if budget > (64 << 20) else 32


def _skip_lstm_kernel(x_ref, wih_ref, whh_ref, b_ref, o_ref,
                      h_scr, c_scr, gx_scr):
    """One (batch-block, time-tile) step of the skip-LSTM recurrence.

    x_ref  : (TILE_T, Bkb, D)      bf16  input tile (phase-stacked batch)
    wih_ref: (D, 4*Hp)             bf16  gate order [i | f | o | g], H -> Hp
    whh_ref: (Hp, 4*Hp)            bf16
    b_ref  : (1, 4*Hp)             f32   (b_ih + b_hh)
    o_ref  : (TILE_T, Bkb, Hp)     bf16  hidden-state outputs
    h_scr  : (Bkb, Hp)             bf16  recurrent h carry (persists over time)
    c_scr  : (Bkb, Hp)             f32   recurrent c carry
    gx_scr : (TILE_T, Bkb, 4*Hp)   f32   hoisted input projection
    """
    tile_t, bkb, d = x_ref.shape
    hp = h_scr.shape[1]

    @pl.when(pl.program_id(1) == 0)
    def _():
        h_scr[...] = jnp.zeros_like(h_scr)
        c_scr[...] = jnp.zeros_like(c_scr)

    # Hoisted, time-independent input projection: one large MXU matmul per
    # tile; bias added once, outside the serial recurrence.
    x_flat = x_ref[...].reshape(tile_t * bkb, d)
    gx = jnp.dot(x_flat, wih_ref[...], preferred_element_type=jnp.float32)
    gx = gx + b_ref[...]                                  # (TILE_T*Bkb, 4Hp)
    gx_scr[...] = gx.reshape(tile_t, bkb, 4 * hp)

    whh = whh_ref[...]

    def step(tt, carry):
        h, c = carry                                      # h bf16, c f32
        # Leading-axis dynamic index: copy-free read of one (Bkb, 4Hp) slab.
        gates = gx_scr[tt] + jnp.dot(h, whh,
                                     preferred_element_type=jnp.float32)
        # gate layout [i | f | o | g]: one tanh-based sigmoid over a contiguous
        # 3*Hp slab, one tanh over the last Hp; slice edges are 128-lane aligned.
        ifo = 0.5 * jnp.tanh(0.5 * gates[:, :3 * hp]) + 0.5
        g = jnp.tanh(gates[:, 3 * hp:])
        i_g = ifo[:, 0 * hp:1 * hp]
        f_g = ifo[:, 1 * hp:2 * hp]
        o_g = ifo[:, 2 * hp:3 * hp]
        c_new = f_g * c + i_g * g
        h_new = (o_g * jnp.tanh(c_new)).astype(o_ref.dtype)   # bf16 carry/output
        o_ref[tt] = h_new                                 # lane-dense store
        return h_new, c_new

    h_out, c_out = lax.fori_loop(0, tile_t, step,
                                 (h_scr[...], c_scr[...]),
                                 unroll=min(tile_t, 8))
    h_scr[...] = h_out
    c_scr[...] = c_out


def _vmem_bytes(tile_t, bkb, d, hp):
    x_b = 2 * tile_t * bkb * d * 2                        # bf16 input, double-buffered
    o_b = 2 * tile_t * bkb * hp * 2                       # bf16 output, double-buffered
    w_b = d * 4 * hp * 2 + hp * 4 * hp * 2 + 4 * hp * 4   # single-buffered weights
    s_b = bkb * hp * (2 + 4)                              # h (bf16) + c (f32) carries
    g_b = tile_t * bkb * 4 * hp * 4                       # hoisted-gates scratch
    return x_b + o_b + w_b + s_b + g_b


def _pick_tile_t(tk, bkb, d, hp, budget, max_t):
    """Largest tile <= max_t whose working set fits the VMEM budget."""
    t = min(tk, max_t)
    while t > 1 and _vmem_bytes(t, bkb, d, hp) > budget:
        t -= 1
    return t


def _run_lstm_pallas(x_tm, wih, whh, b2d):
    """x_tm: (Tk, Bk_pad, D) bf16 time-major, Bk_pad % 8 == 0.
    Returns (Tk, Bk_pad, Hp) bf16 hidden states."""
    tk, bkp, d = x_tm.shape
    hp = whh.shape[0]

    budget = _vmem_budget()
    max_t = _max_tile_t(budget)

    # Optional batch split so v7x's second TensorCore gets work; each block
    # must remain sublane-aligned (>= 8 rows).
    nb = 2 if (bkp >= 16 and bkp % 16 == 0) else 1
    bk_block = bkp // nb

    tile_t = _pick_tile_t(tk, bk_block, d, hp, budget, max_t)
    tk_pad = ((tk + tile_t - 1) // tile_t) * tile_t
    if tk_pad != tk:
        # End-padding is safe for a forward-only recurrence: the extra steps'
        # outputs are dropped and the carry after the real steps is unused.
        x_tm = jnp.pad(x_tm, ((0, tk_pad - tk), (0, 0), (0, 0)))
    grid = (nb, tk_pad // tile_t)

    grid_spec = pltpu.PrefetchScalarGridSpec(
        num_scalar_prefetch=0,
        grid=grid,
        in_specs=[
            pl.BlockSpec((tile_t, bk_block, d), lambda bi, ti: (ti, bi, 0)),
            # Constant-index weights/bias: single-buffer to free VMEM for a
            # deeper time tile (matters most on v7x's 64 MiB VMEM).
            pl.BlockSpec((d, 4 * hp), lambda bi, ti: (0, 0),
                         pipeline_mode=pl.Buffered(1)),
            pl.BlockSpec((hp, 4 * hp), lambda bi, ti: (0, 0),
                         pipeline_mode=pl.Buffered(1)),
            pl.BlockSpec((1, 4 * hp), lambda bi, ti: (0, 0),
                         pipeline_mode=pl.Buffered(1)),
        ],
        out_specs=pl.BlockSpec((tile_t, bk_block, hp),
                               lambda bi, ti: (ti, bi, 0)),
        scratch_shapes=[
            pltpu.VMEM((bk_block, hp), jnp.bfloat16),           # h carry
            pltpu.VMEM((bk_block, hp), jnp.float32),            # c carry
            pltpu.VMEM((tile_t, bk_block, 4 * hp), jnp.float32),  # hoisted gates
        ],
    )

    out = pl.pallas_call(
        _skip_lstm_kernel,
        out_shape=jax.ShapeDtypeStruct((tk_pad, bkp, hp), jnp.bfloat16),
        grid_spec=grid_spec,
        compiler_params=pltpu.CompilerParams(
            # Batch blocks are independent (parallel); time is sequential.
            # TODO(synk): branches could alternatively be spread over v7x's two
            # TensorCores with pl.core_map; batch splitting is used instead.
            dimension_semantics=("parallel", "arbitrary"),
            vmem_limit_bytes=budget,
        ),
    )(x_tm, wih, whh, b2d)
    return out[:tk]


def skip_lstm_forward(x, params, k, hidden_size):
    """x: (B, T, D) float32. Returns (B, T, H) float32."""
    B, T, D = x.shape
    assert T % k == 0, "sequence length must be divisible by skip factor k"
    tk = T // k
    wih, whh, b2d = params
    bk = B * k
    bk_pad = ((bk + 7) // 8) * 8

    # Phase split: x_tm[j, b*k + p] = x[b, j*k + p]   (time-major, phase-stacked)
    x_tm = (x.reshape(B, tk, k, D)
             .transpose(1, 0, 2, 3)
             .reshape(tk, bk, D))
    if bk_pad != bk:
        # Sublane-pad the phase batch; padded rows carry bias-driven (nonzero)
        # state but are sliced off below before any use.
        x_tm = jnp.pad(x_tm, ((0, 0), (0, bk_pad - bk), (0, 0)))
    x_tm = x_tm.astype(jnp.bfloat16)

    out_tm = _run_lstm_pallas(x_tm, wih, whh, b2d)       # (tk, bk_pad, Hp) bf16
    out_tm = out_tm[:, :bk, :hidden_size]                # drop pad rows / lanes

    # Re-interleave: out[b, j*k + p] = out_tm[j, b*k + p]
    out = (out_tm.reshape(tk, B, k, hidden_size)
                 .transpose(1, 0, 2, 3)
                 .reshape(B, T, hidden_size))
    return out.astype(jnp.float32)


def init_skip_lstm_params(key, input_size, hidden_size):
    """Deterministic nn.LSTM-like parameters, repacked for the kernel:
       - gate blocks reordered from PyTorch (i,f,g,o) to (i,f,o,g)
       - hidden width padded to a multiple of 128 lanes (padded units stay
         exactly zero through the recurrence: zero weights/bias -> g = 0,
         c starts at 0 -> c, h remain 0)
       - weights pre-transposed to (D,4Hp)/(Hp,4Hp) and cast to bf16
       - bias folded (b_ih + b_hh), kept f32, shape (1, 4Hp)."""
    H = hidden_size
    Hp = ((H + _LANE - 1) // _LANE) * _LANE
    k1, k2, k3, k4 = jax.random.split(key, 4)
    scale = 1.0 / jnp.sqrt(H)
    w_ih = jax.random.uniform(k1, (4 * H, input_size),
                              minval=-scale, maxval=scale, dtype=jnp.float32)
    w_hh = jax.random.uniform(k2, (4 * H, H),
                              minval=-scale, maxval=scale, dtype=jnp.float32)
    b_ih = jax.random.uniform(k3, (4 * H,),
                              minval=-scale, maxval=scale, dtype=jnp.float32)
    b_hh = jax.random.uniform(k4, (4 * H,),
                              minval=-scale, maxval=scale, dtype=jnp.float32)

    perm = jnp.array([0, 1, 3, 2])   # (i, f, g, o) -> (i, f, o, g)

    def pack_w(w_t, rows, rows_p):
        # w_t: (rows, 4H) -> (rows_p, 4Hp): gate reorder + per-gate H->Hp pad.
        w = w_t.reshape(rows, 4, H)[:, perm, :]
        w = jnp.pad(w, ((0, rows_p - rows), (0, 0), (0, Hp - H)))
        return w.reshape(rows_p, 4 * Hp).astype(jnp.bfloat16)

    wih = pack_w(w_ih.T, input_size, input_size)
    whh = pack_w(w_hh.T, H, Hp)
    b = (b_ih + b_hh).reshape(4, H)[perm, :]
    b = jnp.pad(b, ((0, 0), (0, Hp - H))).reshape(1, 4 * Hp)
    return (wih, whh, b)


def msslstm_forward(x, branch_params, k_list, h_size_list):
    """MSSLSTM: run each SkipLSTM branch and concat on the feature axis."""
    # TODO(synk): branches sharing the same skip factor k (and padded Hp) could
    # be stacked onto the batch axis into one pallas_call; the demo config has
    # distinct k per branch so each keeps its own phase decomposition.
    res = [skip_lstm_forward(x, p, k, h)
           for p, k, h in zip(branch_params, k_list, h_size_list)]
    return jnp.concatenate(res, axis=2)


if __name__ == "__main__":
    # small shapes: batch=2, seq=8, input_size=4
    B, T, D = 2, 8, 4
    k_list = [1, 2]
    h_size_list = [32, 16]

    key = jax.random.PRNGKey(0)
    kx, kp = jax.random.split(key)
    x = jax.random.normal(kx, (B, T, D), dtype=jnp.float32)

    pkeys = jax.random.split(kp, len(k_list))
    branch_params = [init_skip_lstm_params(pk, D, h)
                     for pk, h in zip(pkeys, h_size_list)]

    fwd = jax.jit(functools.partial(msslstm_forward,
                                    k_list=k_list, h_size_list=h_size_list))
    out = jax.block_until_ready(fwd(x, branch_params))

    assert out.shape == (B, T, sum(h_size_list)), out.shape
    assert bool(jnp.all(jnp.isfinite(out)))
    print("KERNEL_OK")
</pallas_src>

<mosaic_0001>
module attributes {stable_mosaic.version = 11 : i64} {
  func.func @_skip_lstm_kernel(%arg0: i32, %arg1: i32, %arg2: memref<8x8x4xbf16, #tpu.memory_space<vmem>>, %arg3: memref<4x512xbf16, #tpu.memory_space<vmem>>, %arg4: memref<128x512xbf16, #tpu.memory_space<vmem>>, %arg5: memref<1x512xf32, #tpu.memory_space<vmem>>, %arg6: memref<8x8x128xbf16, #tpu.memory_space<vmem>>, %arg7: memref<8x128xbf16, #tpu.memory_space<vmem>>, %arg8: memref<8x128xf32, #tpu.memory_space<vmem>>, %arg9: memref<8x8x512xf32, #tpu.memory_space<vmem>>) attributes {dimension_semantics = [#tpu.dimension_semantics<parallel>, #tpu.dimension_semantics<arbitrary>], iteration_bounds = array<i64: 1, 1>, scalar_prefetch = 0 : i64, scratch_operands = 3 : i64, tpu.core_type = #tpu.core_type<tc>, window_params = [{transform_indices = @transform_0, window_bounds = array<i64: 8, 8, 4>}, {pipeline_mode = #tpu.pipeline_mode<synchronous>, transform_indices = @transform_1, window_bounds = array<i64: 4, 512>}, {pipeline_mode = #tpu.pipeline_mode<synchronous>, transform_indices = @transform_2, window_bounds = array<i64: 128, 512>}, {pipeline_mode = #tpu.pipeline_mode<synchronous>, transform_indices = @transform_3, window_bounds = array<i64: 1, 512>}, {transform_indices = @transform_4, window_bounds = array<i64: 8, 8, 128>}]} {
    %c0_i32 = arith.constant 0 : i32
    %0 = arith.cmpi eq, %arg1, %c0_i32 : i32
    %1 = arith.extui %0 : i1 to i32
    %c0_i32_0 = arith.constant 0 : i32
    %2 = arith.cmpi ne, %1, %c0_i32_0 : i32
    scf.if %2 {
      %cst_85 = arith.constant 0.000000e+00 : bf16
      %241 = vector.broadcast %cst_85 : bf16 to vector<8x128xbf16>
      %c0_86 = arith.constant 0 : index
      %c0_87 = arith.constant 0 : index
      %242 = vector.load %arg7[%c0_86, %c0_87] : memref<8x128xbf16, #tpu.memory_space<vmem>>, vector<8x128xbf16>
      tpu.vector_store %arg7[%c0_86, %c0_87], %241 {strides = array<i32>} : memref<8x128xbf16, #tpu.memory_space<vmem>>, vector<8x128xbf16>,
      %cst_88 = arith.constant 0.000000e+00 : f32
      %243 = vector.broadcast %cst_88 : f32 to vector<8x128xf32>
      %c0_89 = arith.constant 0 : index
      %c0_90 = arith.constant 0 : index
      %244 = vector.load %arg8[%c0_89, %c0_90] : memref<8x128xf32, #tpu.memory_space<vmem>>, vector<8x128xf32>
      tpu.vector_store %arg8[%c0_89, %c0_90], %243 {strides = array<i32>} : memref<8x128xf32, #tpu.memory_space<vmem>>, vector<8x128xf32>,
    } else {
    }
    %c0 = arith.constant 0 : index
    %c0_1 = arith.constant 0 : index
    %c0_2 = arith.constant 0 : index
    %3 = vector.load %arg2[%c0, %c0_1, %c0_2] : memref<8x8x4xbf16, #tpu.memory_space<vmem>>, vector<8x8x4xbf16>
    %4 = vector.shape_cast %3 : vector<8x8x4xbf16> to vector<64x4xbf16>
    %c0_3 = arith.constant 0 : index
    %c0_4 = arith.constant 0 : index
    %5 = vector.load %arg3[%c0_3, %c0_4] : memref<4x512xbf16, #tpu.memory_space<vmem>>, vector<4x512xbf16>
    %cst = arith.constant dense<0.000000e+00> : vector<64x512xf32>
    %6 = tpu.matmul %4, %5, %cst {dimension_numbers = #tpu.dot_dimension_numbers<[1], [0], [0], [1], [0, 0, 1, 1], [], []>} : vector<64x4xbf16>, vector<4x512xbf16>, vector<64x512xf32> -> vector<64x512xf32>
    %c0_5 = arith.constant 0 : index
    %c0_6 = arith.constant 0 : index
    %7 = vector.load %arg5[%c0_5, %c0_6] : memref<1x512xf32, #tpu.memory_space<vmem>>, vector<1x512xf32>
    %8 = vector.broadcast %7 : vector<1x512xf32> to vector<64x512xf32>
    %9 = arith.addf %6, %8 : vector<64x512xf32>
    %10 = vector.shape_cast %9 : vector<64x512xf32> to vector<8x8x512xf32>
    %c0_7 = arith.constant 0 : index
    %c0_8 = arith.constant 0 : index
    %c0_9 = arith.constant 0 : index
    %11 = vector.load %arg9[%c0_7, %c0_8, %c0_9] : memref<8x8x512xf32, #tpu.memory_space<vmem>>, vector<8x8x512xf32>
    tpu.vector_store %arg9[%c0_7, %c0_8, %c0_9], %10 {strides = array<i32>} : memref<8x8x512xf32, #tpu.memory_space<vmem>>, vector<8x8x512xf32>,
    %c0_10 = arith.constant 0 : index
    %c0_11 = arith.constant 0 : index
    %12 = vector.load %arg4[%c0_10, %c0_11] : memref<128x512xbf16, #tpu.memory_space<vmem>>, vector<128x512xbf16>
    %c0_12 = arith.constant 0 : index
    %c0_13 = arith.constant 0 : index
    %13 = vector.load %arg7[%c0_12, %c0_13] : memref<8x128xbf16, #tpu.memory_space<vmem>>, vector<8x128xbf16>
    %c0_14 = arith.constant 0 : index
    %c0_15 = arith.constant 0 : index
    %14 = vector.load %arg8[%c0_14, %c0_15] : memref<8x128xf32, #tpu.memory_space<vmem>>, vector<8x128xf32>
    %c0_i32_16 = arith.constant 0 : i32
    %15 = arith.index_cast %c0_i32_16 : i32 to index
    %c0_17 = arith.constant 0 : index
    %c0_18 = arith.constant 0 : index
    %16 = vector.load %arg9[%15, %c0_17, %c0_18] : memref<8x8x512xf32, #tpu.memory_space<vmem>>, vector<1x8x512xf32>
    %17 = vector.shape_cast %16 : vector<1x8x512xf32> to vector<8x512xf32>
    %cst_19 = arith.constant dense<0.000000e+00> : vector<8x512xf32>
    %18 = tpu.matmul %13, %12, %cst_19 {dimension_numbers = #tpu.dot_dimension_numbers<[1], [0], [0], [1], [0, 0, 1, 1], [], []>} : vector<8x128xbf16>, vector<128x512xbf16>, vector<8x512xf32> -> vector<8x512xf32>
    %19 = arith.addf %17, %18 : vector<8x512xf32>
    %20 = vector.extract_strided_slice %19 {offsets = [0, 0], sizes = [8, 384], strides = [1, 1]} : vector<8x512xf32> to vector<8x384xf32>
    %cst_20 = arith.constant 5.000000e-01 : f32
    %21 = vector.broadcast %cst_20 : f32 to vector<8x384xf32>
    %22 = arith.mulf %21, %20 : vector<8x384xf32>
    %23 = math.tanh %22 : vector<8x384xf32>
    %cst_21 = arith.constant 5.000000e-01 : f32
    %24 = vector.broadcast %cst_21 : f32 to vector<8x384xf32>
    %25 = arith.mulf %24, %23 : vector<8x384xf32>
    %cst_22 = arith.constant 5.000000e-01 : f32
    %26 = vector.broadcast %cst_22 : f32 to vector<8x384xf32>
    %27 = arith.addf %25, %26 : vector<8x384xf32>
    %28 = vector.extract_strided_slice %19 {offsets = [0, 384], sizes = [8, 128], strides = [1, 1]} : vector<8x512xf32> to vector<8x128xf32>
    %29 = math.tanh %28 : vector<8x128xf32>
    %30 = vector.extract_strided_slice %27 {offsets = [0, 0], sizes = [8, 128], strides = [1, 1]} : vector<8x384xf32> to vector<8x128xf32>
    %31 = vector.extract_strided_slice %27 {offsets = [0, 128], sizes = [8, 128], strides = [1, 1]} : vector<8x384xf32> to vector<8x128xf32>
    %32 = vector.extract_strided_slice %27 {offsets = [0, 256], sizes = [8, 128], strides = [1, 1]} : vector<8x384xf32> to vector<8x128xf32>
    %33 = arith.mulf %31, %14 : vector<8x128xf32>
    %34 = arith.mulf %30, %29 : vector<8x128xf32>
    %35 = arith.addf %33, %34 : vector<8x128xf32>
    %36 = math.tanh %35 : vector<8x128xf32>
    %37 = arith.mulf %32, %36 : vector<8x128xf32>
    %38 = arith.truncf %37 : vector<8x128xf32> to vector<8x128xbf16>
    %39 = arith.index_cast %c0_i32_16 : i32 to index
    %c0_23 = arith.constant 0 : index
    %c0_24 = arith.constant 0 : index
    %40 = vector.load %arg6[%39, %c0_23, %c0_24] : memref<8x8x128xbf16, #tpu.memory_space<vmem>>, vector<1x8x128xbf16>
    %41 = vector.shape_cast %40 : vector<1x8x128xbf16> to vector<8x128xbf16>
    %42 = vector.shape_cast %38 : vector<8x128xbf16> to vector<1x8x128xbf16>
    tpu.vector_store %arg6[%39, %c0_23, %c0_24], %42 {strides = array<i32>} : memref<8x8x128xbf16, #tpu.memory_space<vmem>>, vector<1x8x128xbf16>,
    %c1_i32 = arith.constant 1 : i32
    %43 = arith.index_cast %c1_i32 : i32 to index
    %c0_25 = arith.constant 0 : index
    %c0_26 = arith.constant 0 : index
    %44 = vector.load %arg9[%43, %c0_25, %c0_26] : memref<8x8x512xf32, #tpu.memory_space<vmem>>, vector<1x8x512xf32>
    %45 = vector.shape_cast %44 : vector<1x8x512xf32> to vector<8x512xf32>
    %cst_27 = arith.constant dense<0.000000e+00> : vector<8x512xf32>
    %46 = tpu.matmul %38, %12, %cst_27 {dimension_numbers = #tpu.dot_dimension_numbers<[1], [0], [0], [1], [0, 0, 1, 1], [], []>} : vector<8x128xbf16>, vector<128x512xbf16>, vector<8x512xf32> -> vector<8x512xf32>
    %47 = arith.addf %45, %46 : vector<8x512xf32>
    %48 = vector.extract_strided_slice %47 {offsets = [0, 0], sizes = [8, 384], strides = [1, 1]} : vector<8x512xf32> to vector<8x384xf32>
    %cst_28 = arith.constant 5.000000e-01 : f32
    %49 = vector.broadcast %cst_28 : f32 to vector<8x384xf32>
    %50 = arith.mulf %49, %48 : vector<8x384xf32>
    %51 = math.tanh %50 : vector<8x384xf32>
    %cst_29 = arith.constant 5.000000e-01 : f32
    %52 = vector.broadcast %cst_29 : f32 to vector<8x384xf32>
    %53 = arith.mulf %52, %51 : vector<8x384xf32>
    %cst_30 = arith.constant 5.000000e-01 : f32
    %54 = vector.broadcast %cst_30 : f32 to vector<8x384xf32>
    %55 = arith.addf %53, %54 : vector<8x384xf32>
    %56 = vector.extract_strided_slice %47 {offsets = [0, 384], sizes = [8, 128], strides = [1, 1]} : vector<8x512xf32> to vector<8x128xf32>
    %57 = math.tanh %56 : vector<8x128xf32>
    %58 = vector.extract_strided_slice %55 {offsets = [0, 0], sizes = [8, 128], strides = [1, 1]} : vector<8x384xf32> to vector<8x128xf32>
    %59 = vector.extract_strided_slice %55 {offsets = [0, 128], sizes = [8, 128], strides = [1, 1]} : vector<8x384xf32> to vector<8x128xf32>
    %60 = vector.extract_strided_slice %55 {offsets = [0, 256], sizes = [8, 128], strides = [1, 1]} : vector<8x384xf32> to vector<8x128xf32>
    %61 = arith.mulf %59, %35 : vector<8x128xf32>
    %62 = arith.mulf %58, %57 : vector<8x128xf32>
    %63 = arith.addf %61, %62 : vector<8x128xf32>
    %64 = math.tanh %63 : vector<8x128xf32>
    %65 = arith.mulf %60, %64 : vector<8x128xf32>
    %66 = arith.truncf %65 : vector<8x128xf32> to vector<8x128xbf16>
    %67 = arith.index_cast %c1_i32 : i32 to index
    %c0_31 = arith.constant 0 : index
    %c0_32 = arith.constant 0 : index
    %68 = vector.load %arg6[%67, %c0_31, %c0_32] : memref<8x8x128xbf16, #tpu.memory_space<vmem>>, vector<1x8x128xbf16>
    %69 = vector.shape_cast %68 : vector<1x8x128xbf16> to vector<8x128xbf16>
    %70 = vector.shape_cast %66 : vector<8x128xbf16> to vector<1x8x128xbf16>
    tpu.vector_store %arg6[%67, %c0_31, %c0_32], %70 {strides = array<i32>} : memref<8x8x128xbf16, #tpu.memory_space<vmem>>, vector<1x8x128xbf16>,
    %c2_i32 = arith.constant 2 : i32
    %71 = arith.index_cast %c2_i32 : i32 to index
    %c0_33 = arith.constant 0 : index
    %c0_34 = arith.constant 0 : index
    %72 = vector.load %arg9[%71, %c0_33, %c0_34] : memref<8x8x512xf32, #tpu.memory_space<vmem>>, vector<1x8x512xf32>
    %73 = vector.shape_cast %72 : vector<1x8x512xf32> to vector<8x512xf32>
    %cst_35 = arith.constant dense<0.000000e+00> : vector<8x512xf32>
    %74 = tpu.matmul %66, %12, %cst_35 {dimension_numbers = #tpu.dot_dimension_numbers<[1], [0], [0], [1], [0, 0, 1, 1], [], []>} : vector<8x128xbf16>, vector<128x512xbf16>, vector<8x512xf32> -> vector<8x512xf32>
    %75 = arith.addf %73, %74 : vector<8x512xf32>
    %76 = vector.extract_strided_slice %75 {offsets = [0, 0], sizes = [8, 384], strides = [1, 1]} : vector<8x512xf32> to vector<8x384xf32>
    %cst_36 = arith.constant 5.000000e-01 : f32
    %77 = vector.broadcast %cst_36 : f32 to vector<8x384xf32>
    %78 = arith.mulf %77, %76 : vector<8x384xf32>
    %79 = math.tanh %78 : vector<8x384xf32>
    %cst_37 = arith.constant 5.000000e-01 : f32
    %80 = vector.broadcast %cst_37 : f32 to vector<8x384xf32>
    %81 = arith.mulf %80, %79 : vector<8x384xf32>
    %cst_38 = arith.constant 5.000000e-01 : f32
    %82 = vector.broadcast %cst_38 : f32 to vector<8x384xf32>
    %83 = arith.addf %81, %82 : vector<8x384xf32>
    %84 = vector.extract_strided_slice %75 {offsets = [0, 384], sizes = [8, 128], strides = [1, 1]} : vector<8x512xf32> to vector<8x128xf32>
    %85 = math.tanh %84 : vector<8x128xf32>
    %86 = vector.extract_strided_slice %83 {offsets = [0, 0], sizes = [8, 128], strides = [1, 1]} : vector<8x384xf32> to vector<8x128xf32>
    %87 = vector.extract_strided_slice %83 {offsets = [0, 128], sizes = [8, 128], strides = [1, 1]} : vector<8x384xf32> to vector<8x128xf32>
    %88 = vector.extract_strided_slice %83 {offsets = [0, 256], sizes = [8, 128], strides = [1, 1]} : vector<8x384xf32> to vector<8x128xf32>
    %89 = arith.mulf %87, %63 : vector<8x128xf32>
    %90 = arith.mulf %86, %85 : vector<8x128xf32>
    %91 = arith.addf %89, %90 : vector<8x128xf32>
    %92 = math.tanh %91 : vector<8x128xf32>
    %93 = arith.mulf %88, %92 : vector<8x128xf32>
    %94 = arith.truncf %93 : vector<8x128xf32> to vector<8x128xbf16>
    %95 = arith.index_cast %c2_i32 : i32 to index
    %c0_39 = arith.constant 0 : index
    %c0_40 = arith.constant 0 : index
    %96 = vector.load %arg6[%95, %c0_39, %c0_40] : memref<8x8x128xbf16, #tpu.memory_space<vmem>>, vector<1x8x128xbf16>
    %97 = vector.shape_cast %96 : vector<1x8x128xbf16> to vector<8x128xbf16>
    %98 = vector.shape_cast %94 : vector<8x128xbf16> to vector<1x8x128xbf16>
    tpu.vector_store %arg6[%95, %c0_39, %c0_40], %98 {strides = array<i32>} : memref<8x8x128xbf16, #tpu.memory_space<vmem>>, vector<1x8x128xbf16>,
    %c3_i32 = arith.constant 3 : i32
    %99 = arith.index_cast %c3_i32 : i32 to index
    %c0_41 = arith.constant 0 : index
    %c0_42 = arith.constant 0 : index
    %100 = vector.load %arg9[%99, %c0_41, %c0_42] : memref<8x8x512xf32, #tpu.memory_space<vmem>>, vector<1x8x512xf32>
    %101 = vector.shape_cast %100 : vector<1x8x512xf32> to vector<8x512xf32>
    %cst_43 = arith.constant dense<0.000000e+00> : vector<8x512xf32>
    %102 = tpu.matmul %94, %12, %cst_43 {dimension_numbers = #tpu.dot_dimension_numbers<[1], [0], [0], [1], [0, 0, 1, 1], [], []>} : vector<8x128xbf16>, vector<128x512xbf16>, vector<8x512xf32> -> vector<8x512xf32>
    %103 = arith.addf %101, %102 : vector<8x512xf32>
    %104 = vector.extract_strided_slice %103 {offsets = [0, 0], sizes = [8, 384], strides = [1, 1]} : vector<8x512xf32> to vector<8x384xf32>
    %cst_44 = arith.constant 5.000000e-01 : f32
    %105 = vector.broadcast %cst_44 : f32 to vector<8x384xf32>
    %106 = arith.mulf %105, %104 : vector<8x384xf32>
    %107 = math.tanh %106 : vector<8x384xf32>
    %cst_45 = arith.constant 5.000000e-01 : f32
    %108 = vector.broadcast %cst_45 : f32 to vector<8x384xf32>
    %109 = arith.mulf %108, %107 : vector<8x384xf32>
    %cst_46 = arith.constant 5.000000e-01 : f32
    %110 = vector.broadcast %cst_46 : f32 to vector<8x384xf32>
    %111 = arith.addf %109, %110 : vector<8x384xf32>
    %112 = vector.extract_strided_slice %103 {offsets = [0, 384], sizes = [8, 128], strides = [1, 1]} : vector<8x512xf32> to vector<8x128xf32>
    %113 = math.tanh %112 : vector<8x128xf32>
    %114 = vector.extract_strided_slice %111 {offsets = [0, 0], sizes = [8, 128], strides = [1, 1]} : vector<8x384xf32> to vector<8x128xf32>
    %115 = vector.extract_strided_slice %111 {offsets = [0, 128], sizes = [8, 128], strides = [1, 1]} : vector<8x384xf32> to vector<8x128xf32>
    %116 = vector.extract_strided_slice %111 {offsets = [0, 256], sizes = [8, 128], strides = [1, 1]} : vector<8x384xf32> to vector<8x128xf32>
    %117 = arith.mulf %115, %91 : vector<8x128xf32>
    %118 = arith.mulf %114, %113 : vector<8x128xf32>
    %119 = arith.addf %117, %118 : vector<8x128xf32>
    %120 = math.tanh %119 : vector<8x128xf32>
    %121 = arith.mulf %116, %120 : vector<8x128xf32>
    %122 = arith.truncf %121 : vector<8x128xf32> to vector<8x128xbf16>
    %123 = arith.index_cast %c3_i32 : i32 to index
    %c0_47 = arith.constant 0 : index
    %c0_48 = arith.constant 0 : index
    %124 = vector.load %arg6[%123, %c0_47, %c0_48] : memref<8x8x128xbf16, #tpu.memory_space<vmem>>, vector<1x8x128xbf16>
    %125 = vector.shape_cast %124 : vector<1x8x128xbf16> to vector<8x128xbf16>
    %126 = vector.shape_cast %122 : vector<8x128xbf16> to vector<1x8x128xbf16>
    tpu.vector_store %arg6[%123, %c0_47, %c0_48], %126 {strides = array<i32>} : memref<8x8x128xbf16, #tpu.memory_space<vmem>>, vector<1x8x128xbf16>,
    %c4_i32 = arith.constant 4 : i32
    %127 = arith.index_cast %c4_i32 : i32 to index
    %c0_49 = arith.constant 0 : index
    %c0_50 = arith.constant 0 : index
    %128 = vector.load %arg9[%127, %c0_49, %c0_50] : memref<8x8x512xf32, #tpu.memory_space<vmem>>, vector<1x8x512xf32>
    %129 = vector.shape_cast %128 : vector<1x8x512xf32> to vector<8x512xf32>
    %cst_51 = arith.constant dense<0.000000e+00> : vector<8x512xf32>
    %130 = tpu.matmul %122, %12, %cst_51 {dimension_numbers = #tpu.dot_dimension_numbers<[1], [0], [0], [1], [0, 0, 1, 1], [], []>} : vector<8x128xbf16>, vector<128x512xbf16>, vector<8x512xf32> -> vector<8x512xf32>
    %131 = arith.addf %129, %130 : vector<8x512xf32>
    %132 = vector.extract_strided_slice %131 {offsets = [0, 0], sizes = [8, 384], strides = [1, 1]} : vector<8x512xf32> to vector<8x384xf32>
    %cst_52 = arith.constant 5.000000e-01 : f32
    %133 = vector.broadcast %cst_52 : f32 to vector<8x384xf32>
    %134 = arith.mulf %133, %132 : vector<8x384xf32>
    %135 = math.tanh %134 : vector<8x384xf32>
    %cst_53 = arith.constant 5.000000e-01 : f32
    %136 = vector.broadcast %cst_53 : f32 to vector<8x384xf32>
    %137 = arith.mulf %136, %135 : vector<8x384xf32>
    %cst_54 = arith.constant 5.000000e-01 : f32
    %138 = vector.broadcast %cst_54 : f32 to vector<8x384xf32>
    %139 = arith.addf %137, %138 : vector<8x384xf32>
    %140 = vector.extract_strided_slice %131 {offsets = [0, 384], sizes = [8, 128], strides = [1, 1]} : vector<8x512xf32> to vector<8x128xf32>
    %141 = math.tanh %140 : vector<8x128xf32>
    %142 = vector.extract_strided_slice %139 {offsets = [0, 0], sizes = [8, 128], strides = [1, 1]} : vector<8x384xf32> to vector<8x128xf32>
    %143 = vector.extract_strided_slice %139 {offsets = [0, 128], sizes = [8, 128], strides = [1, 1]} : vector<8x384xf32> to vector<8x128xf32>
    %144 = vector.extract_strided_slice %139 {offsets = [0, 256], sizes = [8, 128], strides = [1, 1]} : vector<8x384xf32> to vector<8x128xf32>
    %145 = arith.mulf %143, %119 : vector<8x128xf32>
    %146 = arith.mulf %142, %141 : vector<8x128xf32>
    %147 = arith.addf %145, %146 : vector<8x128xf32>
    %148 = math.tanh %147 : vector<8x128xf32>
    %149 = arith.mulf %144, %148 : vector<8x128xf32>
    %150 = arith.truncf %149 : vector<8x128xf32> to vector<8x128xbf16>
    %151 = arith.index_cast %c4_i32 : i32 to index
    %c0_55 = arith.constant 0 : index
    %c0_56 = arith.constant 0 : index
    %152 = vector.load %arg6[%151, %c0_55, %c0_56] : memref<8x8x128xbf16, #tpu.memory_space<vmem>>, vector<1x8x128xbf16>
    %153 = vector.shape_cast %152 : vector<1x8x128xbf16> to vector<8x128xbf16>
    %154 = vector.shape_cast %150 : vector<8x128xbf16> to vector<1x8x128xbf16>
    tpu.vector_store %arg6[%151, %c0_55, %c0_56], %154 {strides = array<i32>} : memref<8x8x128xbf16, #tpu.memory_space<vmem>>, vector<1x8x128xbf16>,
    %c5_i32 = arith.constant 5 : i32
    %155 = arith.index_cast %c5_i32 : i32 to index
    %c0_57 = arith.constant 0 : index
    %c0_58 = arith.constant 0 : index
    %156 = vector.load %arg9[%155, %c0_57, %c0_58] : memref<8x8x512xf32, #tpu.memory_space<vmem>>, vector<1x8x512xf32>
    %157 = vector.shape_cast %156 : vector<1x8x512xf32> to vector<8x512xf32>
    %cst_59 = arith.constant dense<0.000000e+00> : vector<8x512xf32>
    %158 = tpu.matmul %150, %12, %cst_59 {dimension_numbers = #tpu.dot_dimension_numbers<[1], [0], [0], [1], [0, 0, 1, 1], [], []>} : vector<8x128xbf16>, vector<128x512xbf16>, vector<8x512xf32> -> vector<8x512xf32>
    %159 = arith.addf %157, %158 : vector<8x512xf32>
    %160 = vector.extract_strided_slice %159 {offsets = [0, 0], sizes = [8, 384], strides = [1, 1]} : vector<8x512xf32> to vector<8x384xf32>
    %cst_60 = arith.constant 5.000000e-01 : f32
    %161 = vector.broadcast %cst_60 : f32 to vector<8x384xf32>
    %162 = arith.mulf %161, %160 : vector<8x384xf32>
    %163 = math.tanh %162 : vector<8x384xf32>
    %cst_61 = arith.constant 5.000000e-01 : f32
    %164 = vector.broadcast %cst_61 : f32 to vector<8x384xf32>
    %165 = arith.mulf %164, %163 : vector<8x384xf32>
    %cst_62 = arith.constant 5.000000e-01 : f32
    %166 = vector.broadcast %cst_62 : f32 to vector<8x384xf32>
    %167 = arith.addf %165, %166 : vector<8x384xf32>
    %168 = vector.extract_strided_slice %159 {offsets = [0, 384], sizes = [8, 128], strides = [1, 1]} : vector<8x512xf32> to vector<8x128xf32>
    %169 = math.tanh %168 : vector<8x128xf32>
    %170 = vector.extract_strided_slice %167 {offsets = [0, 0], sizes = [8, 128], strides = [1, 1]} : vector<8x384xf32> to vector<8x128xf32>
    %171 = vector.extract_strided_slice %167 {offsets = [0, 128], sizes = [8, 128], strides = [1, 1]} : vector<8x384xf32> to vector<8x128xf32>
    %172 = vector.extract_strided_slice %167 {offsets = [0, 256], sizes = [8, 128], strides = [1, 1]} : vector<8x384xf32> to vector<8x128xf32>
    %173 = arith.mulf %171, %147 : vector<8x128xf32>
    %174 = arith.mulf %170, %169 : vector<8x128xf32>
    %175 = arith.addf %173, %174 : vector<8x128xf32>
    %176 = math.tanh %175 : vector<8x128xf32>
    %177 = arith.mulf %172, %176 : vector<8x128xf32>
    %178 = arith.truncf %177 : vector<8x128xf32> to vector<8x128xbf16>
    %179 = arith.index_cast %c5_i32 : i32 to index
    %c0_63 = arith.constant 0 : index
    %c0_64 = arith.constant 0 : index
    %180 = vector.load %arg6[%179, %c0_63, %c0_64] : memref<8x8x128xbf16, #tpu.memory_space<vmem>>, vector<1x8x128xbf16>
    %181 = vector.shape_cast %180 : vector<1x8x128xbf16> to vector<8x128xbf16>
    %182 = vector.shape_cast %178 : vector<8x128xbf16> to vector<1x8x128xbf16>
    tpu.vector_store %arg6[%179, %c0_63, %c0_64], %182 {strides = array<i32>} : memref<8x8x128xbf16, #tpu.memory_space<vmem>>, vector<1x8x128xbf16>,
    %c6_i32 = arith.constant 6 : i32
    %183 = arith.index_cast %c6_i32 : i32 to index
    %c0_65 = arith.constant 0 : index
    %c0_66 = arith.constant 0 : index
    %184 = vector.load %arg9[%183, %c0_65, %c0_66] : memref<8x8x512xf32, #tpu.memory_space<vmem>>, vector<1x8x512xf32>
    %185 = vector.shape_cast %184 : vector<1x8x512xf32> to vector<8x512xf32>
    %cst_67 = arith.constant dense<0.000000e+00> : vector<8x512xf32>
    %186 = tpu.matmul %178, %12, %cst_67 {dimension_numbers = #tpu.dot_dimension_numbers<[1], [0], [0], [1], [0, 0, 1, 1], [], []>} : vector<8x128xbf16>, vector<128x512xbf16>, vector<8x512xf32> -> vector<8x512xf32>
    %187 = arith.addf %185, %186 : vector<8x512xf32>
    %188 = vector.extract_strided_slice %187 {offsets = [0, 0], sizes = [8, 384], strides = [1, 1]} : vector<8x512xf32> to vector<8x384xf32>
    %cst_68 = arith.constant 5.000000e-01 : f32
    %189 = vector.broadcast %cst_68 : f32 to vector<8x384xf32>
    %190 = arith.mulf %189, %188 : vector<8x384xf32>
    %191 = math.tanh %190 : vector<8x384xf32>
    %cst_69 = arith.constant 5.000000e-01 : f32
    %192 = vector.broadcast %cst_69 : f32 to vector<8x384xf32>
    %193 = arith.mulf %192, %191 : vector<8x384xf32>
    %cst_70 = arith.constant 5.000000e-01 : f32
    %194 = vector.broadcast %cst_70 : f32 to vector<8x384xf32>
    %195 = arith.addf %193, %194 : vector<8x384xf32>
    %196 = vector.extract_strided_slice %187 {offsets = [0, 384], sizes = [8, 128], strides = [1, 1]} : vector<8x512xf32> to vector<8x128xf32>
    %197 = math.tanh %196 : vector<8x128xf32>
    %198 = vector.extract_strided_slice %195 {offsets = [0, 0], sizes = [8, 128], strides = [1, 1]} : vector<8x384xf32> to vector<8x128xf32>
    %199 = vector.extract_strided_slice %195 {offsets = [0, 128], sizes = [8, 128], strides = [1, 1]} : vector<8x384xf32> to vector<8x128xf32>
    %200 = vector.extract_strided_slice %195 {offsets = [0, 256], sizes = [8, 128], strides = [1, 1]} : vector<8x384xf32> to vector<8x128xf32>
    %201 = arith.mulf %199, %175 : vector<8x128xf32>
    %202 = arith.mulf %198, %197 : vector<8x128xf32>
    %203 = arith.addf %201, %202 : vector<8x128xf32>
    %204 = math.tanh %203 : vector<8x128xf32>
    %205 = arith.mulf %200, %204 : vector<8x128xf32>
    %206 = arith.truncf %205 : vector<8x128xf32> to vector<8x128xbf16>
    %207 = arith.index_cast %c6_i32 : i32 to index
    %c0_71 = arith.constant 0 : index
    %c0_72 = arith.constant 0 : index
    %208 = vector.load %arg6[%207, %c0_71, %c0_72] : memref<8x8x128xbf16, #tpu.memory_space<vmem>>, vector<1x8x128xbf16>
    %209 = vector.shape_cast %208 : vector<1x8x128xbf16> to vector<8x128xbf16>
    %210 = vector.shape_cast %206 : vector<8x128xbf16> to vector<1x8x128xbf16>
    tpu.vector_store %arg6[%207, %c0_71, %c0_72], %210 {strides = array<i32>} : memref<8x8x128xbf16, #tpu.memory_space<vmem>>, vector<1x8x128xbf16>,
    %c7_i32 = arith.constant 7 : i32
    %211 = arith.index_cast %c7_i32 : i32 to index
    %c0_73 = arith.constant 0 : index
    %c0_74 = arith.constant 0 : index
    %212 = vector.load %arg9[%211, %c0_73, %c0_74] : memref<8x8x512xf32, #tpu.memory_space<vmem>>, vector<1x8x512xf32>
    %213 = vector.shape_cast %212 : vector<1x8x512xf32> to vector<8x512xf32>
    %cst_75 = arith.constant dense<0.000000e+00> : vector<8x512xf32>
    %214 = tpu.matmul %206, %12, %cst_75 {dimension_numbers = #tpu.dot_dimension_numbers<[1], [0], [0], [1], [0, 0, 1, 1], [], []>} : vector<8x128xbf16>, vector<128x512xbf16>, vector<8x512xf32> -> vector<8x512xf32>
    %215 = arith.addf %213, %214 : vector<8x512xf32>
    %216 = vector.extract_strided_slice %215 {offsets = [0, 0], sizes = [8, 384], strides = [1, 1]} : vector<8x512xf32> to vector<8x384xf32>
    %cst_76 = arith.constant 5.000000e-01 : f32
    %217 = vector.broadcast %cst_76 : f32 to vector<8x384xf32>
    %218 = arith.mulf %217, %216 : vector<8x384xf32>
    %219 = math.tanh %218 : vector<8x384xf32>
    %cst_77 = arith.constant 5.000000e-01 : f32
    %220 = vector.broadcast %cst_77 : f32 to vector<8x384xf32>
    %221 = arith.mulf %220, %219 : vector<8x384xf32>
    %cst_78 = arith.constant 5.000000e-01 : f32
    %222 = vector.broadcast %cst_78 : f32 to vector<8x384xf32>
    %223 = arith.addf %221, %222 : vector<8x384xf32>
    %224 = vector.extract_strided_slice %215 {offsets = [0, 384], sizes = [8, 128], strides = [1, 1]} : vector<8x512xf32> to vector<8x128xf32>
    %225 = math.tanh %224 : vector<8x128xf32>
    %226 = vector.extract_strided_slice %223 {offsets = [0, 0], sizes = [8, 128], strides = [1, 1]} : vector<8x384xf32> to vector<8x128xf32>
    %227 = vector.extract_strided_slice %223 {offsets = [0, 128], sizes = [8, 128], strides = [1, 1]} : vector<8x384xf32> to vector<8x128xf32>
    %228 = vector.extract_strided_slice %223 {offsets = [0, 256], sizes = [8, 128], strides = [1, 1]} : vector<8x384xf32> to vector<8x128xf32>
    %229 = arith.mulf %227, %203 : vector<8x128xf32>
    %230 = arith.mulf %226, %225 : vector<8x128xf32>
    %231 = arith.addf %229, %230 : vector<8x128xf32>
    %232 = math.tanh %231 : vector<8x128xf32>
    %233 = arith.mulf %228, %232 : vector<8x128xf32>
    %234 = arith.truncf %233 : vector<8x128xf32> to vector<8x128xbf16>
    %235 = arith.index_cast %c7_i32 : i32 to index
    %c0_79 = arith.constant 0 : index
    %c0_80 = arith.constant 0 : index
    %236 = vector.load %arg6[%235, %c0_79, %c0_80] : memref<8x8x128xbf16, #tpu.memory_space<vmem>>, vector<1x8x128xbf16>
    %237 = vector.shape_cast %236 : vector<1x8x128xbf16> to vector<8x128xbf16>
    %238 = vector.shape_cast %234 : vector<8x128xbf16> to vector<1x8x128xbf16>
    tpu.vector_store %arg6[%235, %c0_79, %c0_80], %238 {strides = array<i32>} : memref<8x8x128xbf16, #tpu.memory_space<vmem>>, vector<1x8x128xbf16>,
    %c8_i32 = arith.constant 8 : i32
    %c0_81 = arith.constant 0 : index
    %c0_82 = arith.constant 0 : index
    %239 = vector.load %arg7[%c0_81, %c0_82] : memref<8x128xbf16, #tpu.memory_space<vmem>>, vector<8x128xbf16>
    tpu.vector_store %arg7[%c0_81, %c0_82], %234 {strides = array<i32>} : memref<8x128xbf16, #tpu.memory_space<vmem>>, vector<8x128xbf16>,
    %c0_83 = arith.constant 0 : index
    %c0_84 = arith.constant 0 : index
    %240 = vector.load %arg8[%c0_83, %c0_84] : memref<8x128xf32, #tpu.memory_space<vmem>>, vector<8x128xf32>
    tpu.vector_store %arg8[%c0_83, %c0_84], %231 {strides = array<i32>} : memref<8x128xf32, #tpu.memory_space<vmem>>, vector<8x128xf32>,
    return
  }
  func.func @transform_0(%arg0: i32, %arg1: i32) -> (i32, i32, i32) {
    %c0_i32 = arith.constant 0 : i32
    %c0_i32_0 = arith.constant 0 : i32
    return %arg1, %arg0, %c0_i32 : i32, i32, i32
  }
  func.func @transform_1(%arg0: i32, %arg1: i32) -> (i32, i32) {
    %c0_i32 = arith.constant 0 : i32
    %c0_i32_0 = arith.constant 0 : i32
    %c0_i32_1 = arith.constant 0 : i32
    return %c0_i32, %c0_i32_0 : i32, i32
  }
  func.func @transform_2(%arg0: i32, %arg1: i32) -> (i32, i32) {
    %c0_i32 = arith.constant 0 : i32
    %c0_i32_0 = arith.constant 0 : i32
    %c0_i32_1 = arith.constant 0 : i32
    return %c0_i32, %c0_i32_0 : i32, i32
  }
  func.func @transform_3(%arg0: i32, %arg1: i32) -> (i32, i32) {
    %c0_i32 = arith.constant 0 : i32
    %c0_i32_0 = arith.constant 0 : i32
    %c0_i32_1 = arith.constant 0 : i32
    return %c0_i32, %c0_i32_0 : i32, i32
  }
  func.func @transform_4(%arg0: i32, %arg1: i32) -> (i32, i32, i32) {
    %c0_i32 = arith.constant 0 : i32
    %c0_i32_0 = arith.constant 0 : i32
    return %arg1, %arg0, %c0_i32 : i32, i32, i32
  }
}

module attributes {stable_mosaic.version = 11 : i64} {
  func.func @_skip_lstm_kernel(%arg0: i32, %arg1: i32, %arg2: memref<4x8x4xbf16, #tpu.memory_space<vmem>>, %arg3: memref<4x512xbf16, #tpu.memory_space<vmem>>, %arg4: memref<128x512xbf16, #tpu.memory_space<vmem>>, %arg5: memref<1x512xf32, #tpu.memory_space<vmem>>, %arg6: memref<4x8x128xbf16, #tpu.memory_space<vmem>>, %arg7: memref<8x128xbf16, #tpu.memory_space<vmem>>, %arg8: memref<8x128xf32, #tpu.memory_space<vmem>>, %arg9: memref<4x8x512xf32, #tpu.memory_space<vmem>>) attributes {dimension_semantics = [#tpu.dimension_semantics<parallel>, #tpu.dimension_semantics<arbitrary>], iteration_bounds = array<i64: 1, 1>, scalar_prefetch = 0 : i64, scratch_operands = 3 : i64, tpu.core_type = #tpu.core_type<tc>, window_params = [{transform_indices = @transform_0, window_bounds = array<i64: 4, 8, 4>}, {pipeline_mode = #tpu.pipeline_mode<synchronous>, transform_indices = @transform_1, window_bounds = array<i64: 4, 512>}, {pipeline_mode = #tpu.pipeline_mode<synchronous>, transform_indices = @transform_2, window_bounds = array<i64: 128, 512>}, {pipeline_mode = #tpu.pipeline_mode<synchronous>, transform_indices = @transform_3, window_bounds = array<i64: 1, 512>}, {transform_indices = @transform_4, window_bounds = array<i64: 4, 8, 128>}]} {
    %c0_i32 = arith.constant 0 : i32
    %0 = arith.cmpi eq, %arg1, %c0_i32 : i32
    %1 = arith.extui %0 : i1 to i32
    %c0_i32_0 = arith.constant 0 : i32
    %2 = arith.cmpi ne, %1, %c0_i32_0 : i32
    scf.if %2 {
      %cst_53 = arith.constant 0.000000e+00 : bf16
      %129 = vector.broadcast %cst_53 : bf16 to vector<8x128xbf16>
      %c0_54 = arith.constant 0 : index
      %c0_55 = arith.constant 0 : index
      %130 = vector.load %arg7[%c0_54, %c0_55] : memref<8x128xbf16, #tpu.memory_space<vmem>>, vector<8x128xbf16>
      tpu.vector_store %arg7[%c0_54, %c0_55], %129 {strides = array<i32>} : memref<8x128xbf16, #tpu.memory_space<vmem>>, vector<8x128xbf16>,
      %cst_56 = arith.constant 0.000000e+00 : f32
      %131 = vector.broadcast %cst_56 : f32 to vector<8x128xf32>
      %c0_57 = arith.constant 0 : index
      %c0_58 = arith.constant 0 : index
      %132 = vector.load %arg8[%c0_57, %c0_58] : memref<8x128xf32, #tpu.memory_space<vmem>>, vector<8x128xf32>
      tpu.vector_store %arg8[%c0_57, %c0_58], %131 {strides = array<i32>} : memref<8x128xf32, #tpu.memory_space<vmem>>, vector<8x128xf32>,
    } else {
    }
    %c0 = arith.constant 0 : index
    %c0_1 = arith.constant 0 : index
    %c0_2 = arith.constant 0 : index
    %3 = vector.load %arg2[%c0, %c0_1, %c0_2] : memref<4x8x4xbf16, #tpu.memory_space<vmem>>, vector<4x8x4xbf16>
    %4 = vector.shape_cast %3 : vector<4x8x4xbf16> to vector<32x4xbf16>
    %c0_3 = arith.constant 0 : index
    %c0_4 = arith.constant 0 : index
    %5 = vector.load %arg3[%c0_3, %c0_4] : memref<4x512xbf16, #tpu.memory_space<vmem>>, vector<4x512xbf16>
    %cst = arith.constant dense<0.000000e+00> : vector<32x512xf32>
    %6 = tpu.matmul %4, %5, %cst {dimension_numbers = #tpu.dot_dimension_numbers<[1], [0], [0], [1], [0, 0, 1, 1], [], []>} : vector<32x4xbf16>, vector<4x512xbf16>, vector<32x512xf32> -> vector<32x512xf32>
    %c0_5 = arith.constant 0 : index
    %c0_6 = arith.constant 0 : index
    %7 = vector.load %arg5[%c0_5, %c0_6] : memref<1x512xf32, #tpu.memory_space<vmem>>, vector<1x512xf32>
    %8 = vector.broadcast %7 : vector<1x512xf32> to vector<32x512xf32>
    %9 = arith.addf %6, %8 : vector<32x512xf32>
    %10 = vector.shape_cast %9 : vector<32x512xf32> to vector<4x8x512xf32>
    %c0_7 = arith.constant 0 : index
    %c0_8 = arith.constant 0 : index
    %c0_9 = arith.constant 0 : index
    %11 = vector.load %arg9[%c0_7, %c0_8, %c0_9] : memref<4x8x512xf32, #tpu.memory_space<vmem>>, vector<4x8x512xf32>
    tpu.vector_store %arg9[%c0_7, %c0_8, %c0_9], %10 {strides = array<i32>} : memref<4x8x512xf32, #tpu.memory_space<vmem>>, vector<4x8x512xf32>,
    %c0_10 = arith.constant 0 : index
    %c0_11 = arith.constant 0 : index
    %12 = vector.load %arg4[%c0_10, %c0_11] : memref<128x512xbf16, #tpu.memory_space<vmem>>, vector<128x512xbf16>
    %c0_12 = arith.constant 0 : index
    %c0_13 = arith.constant 0 : index
    %13 = vector.load %arg7[%c0_12, %c0_13] : memref<8x128xbf16, #tpu.memory_space<vmem>>, vector<8x128xbf16>
    %c0_14 = arith.constant 0 : index
    %c0_15 = arith.constant 0 : index
    %14 = vector.load %arg8[%c0_14, %c0_15] : memref<8x128xf32, #tpu.memory_space<vmem>>, vector<8x128xf32>
    %c0_i32_16 = arith.constant 0 : i32
    %15 = arith.index_cast %c0_i32_16 : i32 to index
    %c0_17 = arith.constant 0 : index
    %c0_18 = arith.constant 0 : index
    %16 = vector.load %arg9[%15, %c0_17, %c0_18] : memref<4x8x512xf32, #tpu.memory_space<vmem>>, vector<1x8x512xf32>
    %17 = vector.shape_cast %16 : vector<1x8x512xf32> to vector<8x512xf32>
    %cst_19 = arith.constant dense<0.000000e+00> : vector<8x512xf32>
    %18 = tpu.matmul %13, %12, %cst_19 {dimension_numbers = #tpu.dot_dimension_numbers<[1], [0], [0], [1], [0, 0, 1, 1], [], []>} : vector<8x128xbf16>, vector<128x512xbf16>, vector<8x512xf32> -> vector<8x512xf32>
    %19 = arith.addf %17, %18 : vector<8x512xf32>
    %20 = vector.extract_strided_slice %19 {offsets = [0, 0], sizes = [8, 384], strides = [1, 1]} : vector<8x512xf32> to vector<8x384xf32>
    %cst_20 = arith.constant 5.000000e-01 : f32
    %21 = vector.broadcast %cst_20 : f32 to vector<8x384xf32>
    %22 = arith.mulf %21, %20 : vector<8x384xf32>
    %23 = math.tanh %22 : vector<8x384xf32>
    %cst_21 = arith.constant 5.000000e-01 : f32
    %24 = vector.broadcast %cst_21 : f32 to vector<8x384xf32>
    %25 = arith.mulf %24, %23 : vector<8x384xf32>
    %cst_22 = arith.constant 5.000000e-01 : f32
    %26 = vector.broadcast %cst_22 : f32 to vector<8x384xf32>
    %27 = arith.addf %25, %26 : vector<8x384xf32>
    %28 = vector.extract_strided_slice %19 {offsets = [0, 384], sizes = [8, 128], strides = [1, 1]} : vector<8x512xf32> to vector<8x128xf32>
    %29 = math.tanh %28 : vector<8x128xf32>
    %30 = vector.extract_strided_slice %27 {offsets = [0, 0], sizes = [8, 128], strides = [1, 1]} : vector<8x384xf32> to vector<8x128xf32>
    %31 = vector.extract_strided_slice %27 {offsets = [0, 128], sizes = [8, 128], strides = [1, 1]} : vector<8x384xf32> to vector<8x128xf32>
    %32 = vector.extract_strided_slice %27 {offsets = [0, 256], sizes = [8, 128], strides = [1, 1]} : vector<8x384xf32> to vector<8x128xf32>
    %33 = arith.mulf %31, %14 : vector<8x128xf32>
    %34 = arith.mulf %30, %29 : vector<8x128xf32>
    %35 = arith.addf %33, %34 : vector<8x128xf32>
    %36 = math.tanh %35 : vector<8x128xf32>
    %37 = arith.mulf %32, %36 : vector<8x128xf32>
    %38 = arith.truncf %37 : vector<8x128xf32> to vector<8x128xbf16>
    %39 = arith.index_cast %c0_i32_16 : i32 to index
    %c0_23 = arith.constant 0 : index
    %c0_24 = arith.constant 0 : index
    %40 = vector.load %arg6[%39, %c0_23, %c0_24] : memref<4x8x128xbf16, #tpu.memory_space<vmem>>, vector<1x8x128xbf16>
    %41 = vector.shape_cast %40 : vector<1x8x128xbf16> to vector<8x128xbf16>
    %42 = vector.shape_cast %38 : vector<8x128xbf16> to vector<1x8x128xbf16>
    tpu.vector_store %arg6[%39, %c0_23, %c0_24], %42 {strides = array<i32>} : memref<4x8x128xbf16, #tpu.memory_space<vmem>>, vector<1x8x128xbf16>,
    %c1_i32 = arith.constant 1 : i32
    %43 = arith.index_cast %c1_i32 : i32 to index
    %c0_25 = arith.constant 0 : index
    %c0_26 = arith.constant 0 : index
    %44 = vector.load %arg9[%43, %c0_25, %c0_26] : memref<4x8x512xf32, #tpu.memory_space<vmem>>, vector<1x8x512xf32>
    %45 = vector.shape_cast %44 : vector<1x8x512xf32> to vector<8x512xf32>
    %cst_27 = arith.constant dense<0.000000e+00> : vector<8x512xf32>
    %46 = tpu.matmul %38, %12, %cst_27 {dimension_numbers = #tpu.dot_dimension_numbers<[1], [0], [0], [1], [0, 0, 1, 1], [], []>} : vector<8x128xbf16>, vector<128x512xbf16>, vector<8x512xf32> -> vector<8x512xf32>
    %47 = arith.addf %45, %46 : vector<8x512xf32>
    %48 = vector.extract_strided_slice %47 {offsets = [0, 0], sizes = [8, 384], strides = [1, 1]} : vector<8x512xf32> to vector<8x384xf32>
    %cst_28 = arith.constant 5.000000e-01 : f32
    %49 = vector.broadcast %cst_28 : f32 to vector<8x384xf32>
    %50 = arith.mulf %49, %48 : vector<8x384xf32>
    %51 = math.tanh %50 : vector<8x384xf32>
    %cst_29 = arith.constant 5.000000e-01 : f32
    %52 = vector.broadcast %cst_29 : f32 to vector<8x384xf32>
    %53 = arith.mulf %52, %51 : vector<8x384xf32>
    %cst_30 = arith.constant 5.000000e-01 : f32
    %54 = vector.broadcast %cst_30 : f32 to vector<8x384xf32>
    %55 = arith.addf %53, %54 : vector<8x384xf32>
    %56 = vector.extract_strided_slice %47 {offsets = [0, 384], sizes = [8, 128], strides = [1, 1]} : vector<8x512xf32> to vector<8x128xf32>
    %57 = math.tanh %56 : vector<8x128xf32>
    %58 = vector.extract_strided_slice %55 {offsets = [0, 0], sizes = [8, 128], strides = [1, 1]} : vector<8x384xf32> to vector<8x128xf32>
    %59 = vector.extract_strided_slice %55 {offsets = [0, 128], sizes = [8, 128], strides = [1, 1]} : vector<8x384xf32> to vector<8x128xf32>
    %60 = vector.extract_strided_slice %55 {offsets = [0, 256], sizes = [8, 128], strides = [1, 1]} : vector<8x384xf32> to vector<8x128xf32>
    %61 = arith.mulf %59, %35 : vector<8x128xf32>
    %62 = arith.mulf %58, %57 : vector<8x128xf32>
    %63 = arith.addf %61, %62 : vector<8x128xf32>
    %64 = math.tanh %63 : vector<8x128xf32>
    %65 = arith.mulf %60, %64 : vector<8x128xf32>
    %66 = arith.truncf %65 : vector<8x128xf32> to vector<8x128xbf16>
    %67 = arith.index_cast %c1_i32 : i32 to index
    %c0_31 = arith.constant 0 : index
    %c0_32 = arith.constant 0 : index
    %68 = vector.load %arg6[%67, %c0_31, %c0_32] : memref<4x8x128xbf16, #tpu.memory_space<vmem>>, vector<1x8x128xbf16>
    %69 = vector.shape_cast %68 : vector<1x8x128xbf16> to vector<8x128xbf16>
    %70 = vector.shape_cast %66 : vector<8x128xbf16> to vector<1x8x128xbf16>
    tpu.vector_store %arg6[%67, %c0_31, %c0_32], %70 {strides = array<i32>} : memref<4x8x128xbf16, #tpu.memory_space<vmem>>, vector<1x8x128xbf16>,
    %c2_i32 = arith.constant 2 : i32
    %71 = arith.index_cast %c2_i32 : i32 to index
    %c0_33 = arith.constant 0 : index
    %c0_34 = arith.constant 0 : index
    %72 = vector.load %arg9[%71, %c0_33, %c0_34] : memref<4x8x512xf32, #tpu.memory_space<vmem>>, vector<1x8x512xf32>
    %73 = vector.shape_cast %72 : vector<1x8x512xf32> to vector<8x512xf32>
    %cst_35 = arith.constant dense<0.000000e+00> : vector<8x512xf32>
    %74 = tpu.matmul %66, %12, %cst_35 {dimension_numbers = #tpu.dot_dimension_numbers<[1], [0], [0], [1], [0, 0, 1, 1], [], []>} : vector<8x128xbf16>, vector<128x512xbf16>, vector<8x512xf32> -> vector<8x512xf32>
    %75 = arith.addf %73, %74 : vector<8x512xf32>
    %76 = vector.extract_strided_slice %75 {offsets = [0, 0], sizes = [8, 384], strides = [1, 1]} : vector<8x512xf32> to vector<8x384xf32>
    %cst_36 = arith.constant 5.000000e-01 : f32
    %77 = vector.broadcast %cst_36 : f32 to vector<8x384xf32>
    %78 = arith.mulf %77, %76 : vector<8x384xf32>
    %79 = math.tanh %78 : vector<8x384xf32>
    %cst_37 = arith.constant 5.000000e-01 : f32
    %80 = vector.broadcast %cst_37 : f32 to vector<8x384xf32>
    %81 = arith.mulf %80, %79 : vector<8x384xf32>
    %cst_38 = arith.constant 5.000000e-01 : f32
    %82 = vector.broadcast %cst_38 : f32 to vector<8x384xf32>
    %83 = arith.addf %81, %82 : vector<8x384xf32>
    %84 = vector.extract_strided_slice %75 {offsets = [0, 384], sizes = [8, 128], strides = [1, 1]} : vector<8x512xf32> to vector<8x128xf32>
    %85 = math.tanh %84 : vector<8x128xf32>
    %86 = vector.extract_strided_slice %83 {offsets = [0, 0], sizes = [8, 128], strides = [1, 1]} : vector<8x384xf32> to vector<8x128xf32>
    %87 = vector.extract_strided_slice %83 {offsets = [0, 128], sizes = [8, 128], strides = [1, 1]} : vector<8x384xf32> to vector<8x128xf32>
    %88 = vector.extract_strided_slice %83 {offsets = [0, 256], sizes = [8, 128], strides = [1, 1]} : vector<8x384xf32> to vector<8x128xf32>
    %89 = arith.mulf %87, %63 : vector<8x128xf32>
    %90 = arith.mulf %86, %85 : vector<8x128xf32>
    %91 = arith.addf %89, %90 : vector<8x128xf32>
    %92 = math.tanh %91 : vector<8x128xf32>
    %93 = arith.mulf %88, %92 : vector<8x128xf32>
    %94 = arith.truncf %93 : vector<8x128xf32> to vector<8x128xbf16>
    %95 = arith.index_cast %c2_i32 : i32 to index
    %c0_39 = arith.constant 0 : index
    %c0_40 = arith.constant 0 : index
    %96 = vector.load %arg6[%95, %c0_39, %c0_40] : memref<4x8x128xbf16, #tpu.memory_space<vmem>>, vector<1x8x128xbf16>
    %97 = vector.shape_cast %96 : vector<1x8x128xbf16> to vector<8x128xbf16>
    %98 = vector.shape_cast %94 : vector<8x128xbf16> to vector<1x8x128xbf16>
    tpu.vector_store %arg6[%95, %c0_39, %c0_40], %98 {strides = array<i32>} : memref<4x8x128xbf16, #tpu.memory_space<vmem>>, vector<1x8x128xbf16>,
    %c3_i32 = arith.constant 3 : i32
    %99 = arith.index_cast %c3_i32 : i32 to index
    %c0_41 = arith.constant 0 : index
    %c0_42 = arith.constant 0 : index
    %100 = vector.load %arg9[%99, %c0_41, %c0_42] : memref<4x8x512xf32, #tpu.memory_space<vmem>>, vector<1x8x512xf32>
    %101 = vector.shape_cast %100 : vector<1x8x512xf32> to vector<8x512xf32>
    %cst_43 = arith.constant dense<0.000000e+00> : vector<8x512xf32>
    %102 = tpu.matmul %94, %12, %cst_43 {dimension_numbers = #tpu.dot_dimension_numbers<[1], [0], [0], [1], [0, 0, 1, 1], [], []>} : vector<8x128xbf16>, vector<128x512xbf16>, vector<8x512xf32> -> vector<8x512xf32>
    %103 = arith.addf %101, %102 : vector<8x512xf32>
    %104 = vector.extract_strided_slice %103 {offsets = [0, 0], sizes = [8, 384], strides = [1, 1]} : vector<8x512xf32> to vector<8x384xf32>
    %cst_44 = arith.constant 5.000000e-01 : f32
    %105 = vector.broadcast %cst_44 : f32 to vector<8x384xf32>
    %106 = arith.mulf %105, %104 : vector<8x384xf32>
    %107 = math.tanh %106 : vector<8x384xf32>
    %cst_45 = arith.constant 5.000000e-01 : f32
    %108 = vector.broadcast %cst_45 : f32 to vector<8x384xf32>
    %109 = arith.mulf %108, %107 : vector<8x384xf32>
    %cst_46 = arith.constant 5.000000e-01 : f32
    %110 = vector.broadcast %cst_46 : f32 to vector<8x384xf32>
    %111 = arith.addf %109, %110 : vector<8x384xf32>
    %112 = vector.extract_strided_slice %103 {offsets = [0, 384], sizes = [8, 128], strides = [1, 1]} : vector<8x512xf32> to vector<8x128xf32>
    %113 = math.tanh %112 : vector<8x128xf32>
    %114 = vector.extract_strided_slice %111 {offsets = [0, 0], sizes = [8, 128], strides = [1, 1]} : vector<8x384xf32> to vector<8x128xf32>
    %115 = vector.extract_strided_slice %111 {offsets = [0, 128], sizes = [8, 128], strides = [1, 1]} : vector<8x384xf32> to vector<8x128xf32>
    %116 = vector.extract_strided_slice %111 {offsets = [0, 256], sizes = [8, 128], strides = [1, 1]} : vector<8x384xf32> to vector<8x128xf32>
    %117 = arith.mulf %115, %91 : vector<8x128xf32>
    %118 = arith.mulf %114, %113 : vector<8x128xf32>
    %119 = arith.addf %117, %118 : vector<8x128xf32>
    %120 = math.tanh %119 : vector<8x128xf32>
    %121 = arith.mulf %116, %120 : vector<8x128xf32>
    %122 = arith.truncf %121 : vector<8x128xf32> to vector<8x128xbf16>
    %123 = arith.index_cast %c3_i32 : i32 to index
    %c0_47 = arith.constant 0 : index
    %c0_48 = arith.constant 0 : index
    %124 = vector.load %arg6[%123, %c0_47, %c0_48] : memref<4x8x128xbf16, #tpu.memory_space<vmem>>, vector<1x8x128xbf16>
    %125 = vector.shape_cast %124 : vector<1x8x128xbf16> to vector<8x128xbf16>
    %126 = vector.shape_cast %122 : vector<8x128xbf16> to vector<1x8x128xbf16>
    tpu.vector_store %arg6[%123, %c0_47, %c0_48], %126 {strides = array<i32>} : memref<4x8x128xbf16, #tpu.memory_space<vmem>>, vector<1x8x128xbf16>,
    %c4_i32 = arith.constant 4 : i32
    %c0_49 = arith.constant 0 : index
    %c0_50 = arith.constant 0 : index
    %127 = vector.load %arg7[%c0_49, %c0_50] : memref<8x128xbf16, #tpu.memory_space<vmem>>, vector<8x128xbf16>
    tpu.vector_store %arg7[%c0_49, %c0_50], %122 {strides = array<i32>} : memref<8x128xbf16, #tpu.memory_space<vmem>>, vector<8x128xbf16>,
    %c0_51 = arith.constant 0 : index
    %c0_52 = arith.constant 0 : index
    %128 = vector.load %arg8[%c0_51, %c0_52] : memref<8x128xf32, #tpu.memory_space<vmem>>, vector<8x128xf32>
    tpu.vector_store %arg8[%c0_51, %c0_52], %119 {strides = array<i32>} : memref<8x128xf32, #tpu.memory_space<vmem>>, vector<8x128xf32>,
    return
  }
  func.func @transform_0(%arg0: i32, %arg1: i32) -> (i32, i32, i32) {
    %c0_i32 = arith.constant 0 : i32
    %c0_i32_0 = arith.constant 0 : i32
    return %arg1, %arg0, %c0_i32 : i32, i32, i32
  }
  func.func @transform_1(%arg0: i32, %arg1: i32) -> (i32, i32) {
    %c0_i32 = arith.constant 0 : i32
    %c0_i32_0 = arith.constant 0 : i32
    %c0_i32_1 = arith.constant 0 : i32
    return %c0_i32, %c0_i32_0 : i32, i32
  }
  func.func @transform_2(%arg0: i32, %arg1: i32) -> (i32, i32) {
    %c0_i32 = arith.constant 0 : i32
    %c0_i32_0 = arith.constant 0 : i32
    %c0_i32_1 = arith.constant 0 : i32
    return %c0_i32, %c0_i32_0 : i32, i32
  }
  func.func @transform_3(%arg0: i32, %arg1: i32) -> (i32, i32) {
    %c0_i32 = arith.constant 0 : i32
    %c0_i32_0 = arith.constant 0 : i32
    %c0_i32_1 = arith.constant 0 : i32
    return %c0_i32, %c0_i32_0 : i32, i32
  }
  func.func @transform_4(%arg0: i32, %arg1: i32) -> (i32, i32, i32) {
    %c0_i32 = arith.constant 0 : i32
    %c0_i32_0 = arith.constant 0 : i32
    return %arg1, %arg0, %c0_i32 : i32, i32, i32
  }
}

</mosaic_0001>

<bundles_post_ra>
// kernel: msslstm_forward.3
= control target key start
LH: loop header
LB: loop body
LE: loop exit
PB: predicated region body
PF: predicated region fallthrough
CT: control target
= control target key end

     0   :  { %v31_v0 = vlaneseq  ;;  %v1003_v2 = vmov 1983009808   ;;  %v1415_v4 = vmov 0   ;;  %vm86_vm0 = vcmask 1041408   ;;  %s1410_s1 = inlined_call_operand.vmem [shape: bf16[4,512], index: 1, kind: input, shape index: {}]   ;;  %s1411_s0 = inlined_call_operand.vmem [shape: bf16[4,8,4], index: 0, kind: input, shape index: {}]   ;;  %s1412_s2 = inlined_call_operand.vmem [shape: bf16[128,512], index: 2, kind: input, shape index: {}]   ;;  %s1413_s3 = inlined_call_operand.vmem [shape: f32[1,512], index: 3, kind: input, shape index: {}]   ;;  %s1414_s4 = inlined_call_operand.vmem [shape: bf16[4,8,128], index: 4, kind: output, shape index: {}]  }
   0x1   :  { %v28_v1 = vld [vmem:[%s1410_s1] sm:$0xff]  ;;  %v64_v3 = vunpack.c.l.s4 %v1003_v2  ;;  %131 = vmatprep.mubr.bf16.mxu0 %v1415_v4  ;;  %22 = vst [vmem:[#allocation2] sm:$0xf] %v1415_v4  ;;  %184 = vmatprep.mubr.bf16.mxu1 %v1415_v4  ;;  %v1047_v16 = vld [vmem:[%s1412_s2 + $0xc] ss:$16 sps:$4 sm:$0xff]   ;;  %vm79_vm1 = vcmask 31744  }
   0x2   :  { %v1036_v5 = vshrl.u32 %v31_v0, 7  ;;  %v62_v7 = vcombine.high %v28_v1, %v28_v1  ;;  %v1042_v11 = vld [vmem:[%s1412_s2 + $0x4] ss:$16 sps:$4 sm:$0xff]   ;;  %v1055_v18 = vld [vmem:[%s1412_s2] ss:$16 sps:$4 sm:$0xff]   ;;  %v948_v27 = vld [vmem:[%s1411_s0 + $0x8] sm:$0xff]  }
   0x3   :  { %v65_v6 = vunpack.c.0.s8 %v64_v3  ;;  %v913_v17 = vld [vmem:[%s1411_s0] sm:$0xff]   ;;  %v1060_v19 = vld [vmem:[%s1412_s2 + $0x8] ss:$16 sps:$4 sm:$0xff]   ;;  %v1072_v21 = vld [vmem:[%s1412_s2 + $0x2c] ss:$16 sps:$4 sm:$0xff]  }
   0x4   :  { %v1065_v20 = vld [vmem:[%s1412_s2 + $0x24] ss:$16 sps:$4 sm:$0xff]   ;;  %v1079_v22 = vld [vmem:[%s1412_s2 + $0x20] ss:$16 sps:$4 sm:$0xff]   ;;  %v1084_v23 = vld [vmem:[%s1412_s2 + $0x28] ss:$16 sps:$4 sm:$0xff]  }
   0x5   :  { %v68_v8 = vsub.s32 %v65_v6, %v1036_v5  ;;  %v1091_v24 = vld [vmem:[%s1412_s2 + $0x44] ss:$16 sps:$4 sm:$0xff]   ;;  %v1098_v25 = vld [vmem:[%s1412_s2 + $0x4c] ss:$16 sps:$4 sm:$0xff]   ;;  %v1103_v26 = vld [vmem:[%s1412_s2 + $0x40] ss:$16 sps:$4 sm:$0xff]  }
   0x6   :  { %v1115_v28 = vld [vmem:[%s1412_s2 + $0x48] ss:$16 sps:$4 sm:$0xff]   ;;  %v1122_v29 = vld [vmem:[%s1412_s2 + $0x64] ss:$16 sps:$4 sm:$0xff]   ;;  %v1127_v30 = vld [vmem:[%s1412_s2 + $0x6c] ss:$16 sps:$4 sm:$0xff]  }
   0x7   :  { %v69_v9 = vrot.slane %v28_v1, %v68_v8  ;;  %v76_v10 = vrot.slane %v62_v7, %v68_v8  ;;  %v1136_v31 = vld [vmem:[%s1412_s2 + $0x60] ss:$16 sps:$4 sm:$0xff]   ;;  %v1141_v32 = vld [vmem:[%s1412_s2 + $0x68] ss:$16 sps:$4 sm:$0xff]   ;;  %v1148_v33 = vld [vmem:[%s1412_s2 + $0x84] ss:$16 sps:$4 sm:$0xff]  }
   0x8   :  { %v1153_v34 = vld [vmem:[%s1412_s2 + $0x8c] ss:$16 sps:$4 sm:$0xff]   ;;  %v1162_v35 = vld [vmem:[%s1412_s2 + $0x80] ss:$16 sps:$4 sm:$0xff]   ;;  %v1167_v36 = vld [vmem:[%s1412_s2 + $0x88] ss:$16 sps:$4 sm:$0xff]  }
   0x9   :  { %v77_v12 = vcombine.high %v69_v9, %v69_v9  ;;  %v78_v13 = vcombine.high %v76_v10, %v76_v10  ;;  %v88_v14 = vsel %vm86_vm0, %v69_v9, 0  ;;  %v94_v15 = vsel %vm86_vm0, %v76_v10, 0  ;;  %v1174_v37 = vld [vmem:[%s1412_s2 + $0xa4] ss:$16 sps:$4 sm:$0xff]   ;;  %v1179_v38 = vld [vmem:[%s1412_s2 + $0xac] ss:$16 sps:$4 sm:$0xff]  }
   0xa   :  { %v1186_v39 = vld [vmem:[%s1412_s2 + $0xa0] ss:$16 sps:$4 sm:$0xff]   ;;  %v1191_v40 = vld [vmem:[%s1412_s2 + $0xa8] ss:$16 sps:$4 sm:$0xff]   ;;  %v1198_v41 = vld [vmem:[%s1412_s2 + $0xc4] ss:$16 sps:$4 sm:$0xff]  }
   0xb   :  { %869 = vmatprep.subr.msk.bf16.mxu0 %vm86_vm0, %v77_v12  ;;  %872 = vmatprep.subr.msk.bf16.mxu1 %vm86_vm0, %v78_v13  ;;  %v1203_v42 = vld [vmem:[%s1412_s2 + $0xcc] ss:$16 sps:$4 sm:$0xff]   ;;  %v1210_v43 = vld [vmem:[%s1412_s2 + $0xc0] ss:$16 sps:$4 sm:$0xff]   ;;  %v1215_v44 = vld [vmem:[%s1412_s2 + $0xc8] ss:$16 sps:$4 sm:$0xff]  }
   0xc   :  { %100 = vmatpush1.bf16.msra.mxu0 %v88_v14  ;;  %153 = vmatpush1.bf16.msra.mxu1 %v94_v15  ;;  %v1222_v45 = vld [vmem:[%s1412_s2 + $0xe4] ss:$16 sps:$4 sm:$0xff]   ;;  %v1227_v46 = vld [vmem:[%s1412_s2 + $0xec] ss:$16 sps:$4 sm:$0xff]   ;;  %v1234_v47 = vld [vmem:[%s1412_s2 + $0xe0] ss:$16 sps:$4 sm:$0xff]  }
   0xd   :  { %419 = vmatprep.subr.bf16.mxu0 %v1042_v11  ;;  %460 = vmatprep.subr.bf16.mxu1 %v1047_v16  ;;  %v1239_v48 = vld [vmem:[%s1412_s2 + $0xe8] ss:$16 sps:$4 sm:$0xff]   ;;  %v253_v49 = vld [vmem:[#allocation2] sm:$0xf]  ;;  %v33_v50 = vsub.s32 0, %v1036_v5  ;;  %v41_v51 = vsub.s32 2, %v1036_v5 }
   0xe   :  { %v29_v52 = vld [vmem:[%s1413_s3] sm:$0xf]  ;;  %v45_v53 = vsub.s32 3, %v1036_v5  ;;  %v37_v54 = vsub.s32 1, %v1036_v5 }
   0xf   :  { %870 = vmatmul.mubr.msk.bf16.vlgmr.msra.gmra.mrb[0].mxu0 %vm79_vm1, %v913_v17  ;;  %873 = vmatmul.mubr.msk.bf16.vlgmr.msra.gmra.mrb[0].mxu1 %vm79_vm1, %v913_v17  ;;  %v34_v55 = vrot.slane %v29_v52, %v33_v50  ;;  %v42_v56 = vrot.slane %v29_v52, %v41_v51 }
  0x10   :  { %420 = vmatpush1.bf16.msra.mxu0 %v1055_v18  ;;  %461 = vmatpush1.bf16.msra.mxu1 %v1060_v19  ;;  %v46_v59 = vrot.slane %v29_v52, %v45_v53  ;;  %v38_v62 = vrot.slane %v29_v52, %v37_v54 }
  0x11   :  { %421 = vmatprep.subr.bf16.mxu0 %v1065_v20  ;;  %462 = vmatprep.subr.bf16.mxu1 %v1072_v21 }
  0x12   :  { %141 = vmatprep.mubr.bf16.mxu0 %v1415_v4  ;;  %194 = vmatprep.mubr.bf16.mxu1 %v1415_v4 }
  0x14   :  { %422 = vmatpush1.bf16.msra.mxu0 %v1079_v22  ;;  %463 = vmatpush1.bf16.msra.mxu1 %v1084_v23 }
  0x15   :  { %423 = vmatprep.subr.bf16.mxu0 %v1091_v24  ;;  %464 = vmatprep.subr.bf16.mxu1 %v1098_v25 }
  0x17   :  { %871 = vmatmul.mubr.msk.bf16.gmra.mrb[4].mxu0 %vm79_vm1, %v948_v27  ;;  %874 = vmatmul.mubr.msk.bf16.gmra.mrb[4].mxu1 %vm79_vm1, %v948_v27 }
  0x18   :  { %424 = vmatpush1.bf16.msra.mxu0 %v1103_v26  ;;  %465 = vmatpush1.bf16.msra.mxu1 %v1115_v28 }
  0x19   :  { %425 = vmatprep.subr.bf16.mxu0 %v1122_v29  ;;  %466 = vmatprep.subr.bf16.mxu1 %v1127_v30 }
  0x1a   :  { %451 = vmatprep.mubr.bf16.mxu0 %v1415_v4  ;;  %492 = vmatprep.mubr.bf16.mxu1 %v1415_v4 }
  0x1c   :  { %426 = vmatpush1.bf16.msra.mxu0 %v1136_v31  ;;  %467 = vmatpush1.bf16.msra.mxu1 %v1141_v32 }
  0x1d   :  { %427 = vmatprep.subr.bf16.mxu0 %v1148_v33  ;;  %468 = vmatprep.subr.bf16.mxu1 %v1153_v34 }
  0x20   :  { %428 = vmatpush1.bf16.msra.mxu0 %v1162_v35  ;;  %469 = vmatpush1.bf16.msra.mxu1 %v1167_v36 }
  0x21   :  { %429 = vmatprep.subr.bf16.mxu0 %v1174_v37  ;;  %470 = vmatprep.subr.bf16.mxu1 %v1179_v38 }
  0x24   :  { %430 = vmatpush1.bf16.msra.mxu0 %v1186_v39  ;;  %471 = vmatpush1.bf16.msra.mxu1 %v1191_v40 }
  0x25   :  { %431 = vmatprep.subr.bf16.mxu0 %v1198_v41  ;;  %472 = vmatprep.subr.bf16.mxu1 %v1203_v42 }
  0x28   :  { %432 = vmatpush1.bf16.msra.mxu0 %v1210_v43  ;;  %473 = vmatpush1.bf16.msra.mxu1 %v1215_v44 }
  0x29   :  { %433 = vmatprep.subr.bf16.mxu0 %v1222_v45  ;;  %474 = vmatprep.subr.bf16.mxu1 %v1227_v46 }
  0x2c   :  { %434 = vmatpush1.bf16.msra.mxu0 %v1234_v47  ;;  %475 = vmatpush1.bf16.msra.mxu1 %v1239_v48 }
  0x2d   :  { %530 = vmatprep.subr.bf16.mxu0 %v1042_v11  ;;  %571 = vmatprep.subr.bf16.mxu1 %v1047_v16 }
  0x2f   :  { %452 = vmatmul.mubr.bf16.vlgmr.msra.gmra.mrb[8].mxu0 %v253_v49  ;;  %493 = vmatmul.mubr.bf16.vlgmr.msra.gmra.mrb[8].mxu1 %v253_v49 }
  0x30   :  { %531 = vmatpush1.bf16.msra.mxu0 %v1055_v18  ;;  %572 = vmatpush1.bf16.msra.mxu1 %v1060_v19 }
  0x31   :  { %532 = vmatprep.subr.bf16.mxu0 %v1065_v20  ;;  %573 = vmatprep.subr.bf16.mxu1 %v1072_v21 }
  0x32   :  { %562 = vmatprep.mubr.bf16.mxu0 %v1415_v4  ;;  %603 = vmatprep.mubr.bf16.mxu1 %v1415_v4 }
  0x34   :  { %533 = vmatpush1.bf16.msra.mxu0 %v1079_v22  ;;  %574 = vmatpush1.bf16.msra.mxu1 %v1084_v23 }
  0x35   :  { %534 = vmatprep.subr.bf16.mxu0 %v1091_v24  ;;  %575 = vmatprep.subr.bf16.mxu1 %v1098_v25 }
  0x38   :  { %535 = vmatpush1.bf16.msra.mxu0 %v1103_v26  ;;  %576 = vmatpush1.bf16.msra.mxu1 %v1115_v28 }
  0x39   :  { %536 = vmatprep.subr.bf16.mxu0 %v1122_v29  ;;  %577 = vmatprep.subr.bf16.mxu1 %v1127_v30 }
  0x3c   :  { %537 = vmatpush1.bf16.msra.mxu0 %v1136_v31  ;;  %578 = vmatpush1.bf16.msra.mxu1 %v1141_v32 }
  0x3d   :  { %538 = vmatprep.subr.bf16.mxu0 %v1148_v33  ;;  %579 = vmatprep.subr.bf16.mxu1 %v1153_v34 }
  0x40   :  { %539 = vmatpush1.bf16.msra.mxu0 %v1162_v35  ;;  %580 = vmatpush1.bf16.msra.mxu1 %v1167_v36 }
  0x41   :  { %540 = vmatprep.subr.bf16.mxu0 %v1174_v37  ;;  %581 = vmatprep.subr.bf16.mxu1 %v1179_v38 }
  0x44   :  { %541 = vmatpush1.bf16.msra.mxu0 %v1186_v39  ;;  %582 = vmatpush1.bf16.msra.mxu1 %v1191_v40 }
  0x45   :  { %542 = vmatprep.subr.bf16.mxu0 %v1198_v41  ;;  %583 = vmatprep.subr.bf16.mxu1 %v1203_v42 }
  0x48   :  { %543 = vmatpush1.bf16.msra.mxu0 %v1210_v43  ;;  %584 = vmatpush1.bf16.msra.mxu1 %v1215_v44 }
  0x49   :  { %544 = vmatprep.subr.bf16.mxu0 %v1222_v45  ;;  %585 = vmatprep.subr.bf16.mxu1 %v1227_v46 }
  0x4c   :  { %545 = vmatpush1.bf16.msra.mxu0 %v1234_v47  ;;  %586 = vmatpush1.bf16.msra.mxu1 %v1239_v48 }
  0x4d   :  { %642 = vmatprep.subr.bf16.mxu0 %v1042_v11  ;;  %683 = vmatprep.subr.bf16.mxu1 %v1047_v16 }
  0xe2   :  { %v133_v57 = vpop.f32.mrb[0].mxu0  ;;  %v186_v58 = vpop.f32.mrb[0].mxu1 }
  0xe3   :  { %v135_v60 = vpop.f32.mrb[1].mxu0  ;;  %v188_v61 = vpop.f32.mrb[1].mxu1 }
  0xe4   :  { %v137_v63 = vpop.f32.mrb[2].mxu0  ;;  %v190_v0 = vpop.f32.mrb[2].mxu1 }
  0xe5   :  { %v1288_v1 = vadd.f32 %v137_v63, %v34_v55  ;;  %v139_v2 = vpop.f32.mrb[3].mxu0  ;;  %v1290_v3 = vadd.f32 %v190_v0, %v42_v56  ;;  %v192_v6 = vpop.f32.mrb[3].mxu1  ;;  %v134_v0 = vadd.f32 %v133_v57, %v34_v55 }
  0xe6   :  { %v1292_v7 = vadd.f32 %v139_v2, %v38_v62  ;;  %v1294_v8 = vadd.f32 %v192_v6, %v46_v59  ;;  %v187_v2 = vadd.f32 %v186_v58, %v42_v56  ;;  %v136_v6 = vadd.f32 %v135_v60, %v38_v62 }
  0xea   :  { %v143_v5 = vpop.f32.mrb[4].mxu0  ;;  %v196_v9 = vpop.f32.mrb[4].mxu1 }
  0xeb   :  { %v1296_v10 = vadd.f32 %v143_v5, %v34_v55  ;;  %v145_v12 = vpop.f32.mrb[5].mxu0  ;;  %v1298_v13 = vadd.f32 %v196_v9, %v42_v56  ;;  %v198_v14 = vpop.f32.mrb[5].mxu1  ;;  %v189_v5 = vadd.f32 %v188_v61, %v46_v59 }
  0xec   :  { %v1300_v15 = vadd.f32 %v145_v12, %v38_v62  ;;  %v147_v17 = vpop.f32.mrb[6].mxu0  ;;  %v1302_v27 = vadd.f32 %v198_v14, %v46_v59  ;;  %v200_v49 = vpop.f32.mrb[6].mxu1 }
  0xed   :  { %1417 = vst [vmem:[#allocation5_spill] sm:$0xff] %v1296_v10  ;;  %1418 = vst [vmem:[#allocation6_spill] sm:$0xff] %v1298_v13  ;;  %v1304_v50 = vadd.f32 %v147_v17, %v34_v55  ;;  %v149_v51 = vpop.f32.mrb[7].mxu0  ;;  %v1306_v52 = vadd.f32 %v200_v49, %v42_v56  ;;  %v202_v53 = vpop.f32.mrb[7].mxu1 }
  0xee   :  { %1419 = vst [vmem:[#allocation7_spill] sm:$0xff] %v1300_v15  ;;  %1420 = vst [vmem:[#allocation8_spill] sm:$0xff] %v1302_v27  ;;  %v1308_v54 = vadd.f32 %v149_v51, %v38_v62  ;;  %v1310_v63 = vadd.f32 %v202_v53, %v46_v59 }
  0xef   :  { %1421 = vst [vmem:[#allocation9_spill] sm:$0xff] %v1304_v50  ;;  %1422 = vst [vmem:[#allocation10_spill] sm:$0xff] %v1306_v52 }
  0xf0   :  { %1423 = vst [vmem:[#allocation11_spill] sm:$0xff] %v1308_v54 }
 0x102   :  { %v453_v9 = vpop.f32.mrb[8].mxu0  ;;  %v494_v12 = vpop.f32.mrb[8].mxu1 }
 0x103   :  { %v501_v4 = vadd.f32 %v453_v9, %v134_v0  ;;  %v503_v14 = vadd.f32 %v494_v12, %v187_v2  ;;  %v455_v27 = vpop.f32.mrb[9].mxu0  ;;  %v496_v15 = vpop.f32.mrb[9].mxu1  ;;  %v1424_v0 = vmov 0  }
 0x104   :  { %v502_v17 = vadd.f32 %v455_v27, %v136_v6  ;;  %v504_v50 = vadd.f32 %v496_v15, %v189_v5  ;;  %v457_v13 = vpop.f32.mrb[10].mxu0  ;;  %v498_v49 = vpop.f32.mrb[10].mxu1 }
 0x105   :  { %v505_v52 = vmul.f32 0.5, %v501_v4  ;;  %v458_v10 = vpop.f32.mrb[11].mxu0  ;;  %v499_v51 = vpop.f32.mrb[11].mxu1  ;;  %v507_v55 = vmul.f32 0.5, %v503_v14 }
 0x106   :  { %v506_v54 = vmul.f32 0.5, %v502_v17 }
 0x107   :  { %963 = vtanh.f32 %v505_v52 }
 0x108   :  { %965 = vtanh.f32 %v506_v54 }
 0x109   :  { %967 = vtanh.f32 %v504_v50 }
 0x10a   :  { %969 = vtanh.f32 %v507_v55 }
 0x111   :  { %v964_v56 = vpop.eup %963 }
 0x112   :  { %v511_v57 = vmul.f32 0.5, %v964_v56  ;;  %v966_v58 = vpop.eup %965 }
 0x113   :  { %v512_v60 = vmul.f32 0.5, %v966_v58  ;;  %v968_v61 = vpop.eup %967 }
 0x114   :  { %v514_v59 = vadd.f32 0.5, %v511_v57  ;;  %v970_v4 = vpop.eup %969 }
 0x115   :  { %v515_v62 = vadd.f32 0.5, %v512_v60  ;;  %v513_v10 = vmul.f32 0.5, %v970_v4 }
 0x116   :  { %v519_v27 = vmul.f32 %v968_v61, %v514_v59 }
 0x117   :  { %v518_v15 = vmul.f32 0.0, %v515_v62  ;;  %v516_v52 = vadd.f32 0.5, %v513_v10 }
 0x119   :  { %v1312_v13 = vadd.f32 %v519_v27, %v518_v15 }
 0x11b   :  { %971 = vtanh.f32 %v1312_v13 }
 0x125   :  { %v972_v53 = vpop.eup %971 }
 0x126   :  { %v522_v50 = vmul.f32 %v972_v53, %v516_v52 }
 0x128   :  { %v523_v54 = vpack.c.bf16 %v522_v50, %v522_v50 }
 0x12a   :  { %524 = vst [vmem:[%s1414_s4] sm:$0xf] %v523_v54  ;;  %563 = vmatmul.mubr.bf16.vlgmr.msra.gmra.mrb[12].mxu0 %v523_v54  ;;  %604 = vmatmul.mubr.bf16.vlgmr.msra.gmra.mrb[12].mxu1 %v523_v54 }
 0x12b   :  { %643 = vmatpush1.bf16.msra.mxu0 %v1055_v18  ;;  %684 = vmatpush1.bf16.msra.mxu1 %v1060_v19 }
 0x12c   :  { %644 = vmatprep.subr.bf16.mxu0 %v1065_v20  ;;  %685 = vmatprep.subr.bf16.mxu1 %v1072_v21 }
 0x12d   :  { %674 = vmatprep.mubr.bf16.mxu0 %v1424_v0  ;;  %715 = vmatprep.mubr.bf16.mxu1 %v1424_v0 }
 0x12f   :  { %645 = vmatpush1.bf16.msra.mxu0 %v1079_v22  ;;  %686 = vmatpush1.bf16.msra.mxu1 %v1084_v23 }
 0x130   :  { %646 = vmatprep.subr.bf16.mxu0 %v1091_v24  ;;  %687 = vmatprep.subr.bf16.mxu1 %v1098_v25 }
 0x133   :  { %647 = vmatpush1.bf16.msra.mxu0 %v1103_v26  ;;  %688 = vmatpush1.bf16.msra.mxu1 %v1115_v28 }
 0x134   :  { %648 = vmatprep.subr.bf16.mxu0 %v1122_v29  ;;  %689 = vmatprep.subr.bf16.mxu1 %v1127_v30 }
 0x137   :  { %649 = vmatpush1.bf16.msra.mxu0 %v1136_v31  ;;  %690 = vmatpush1.bf16.msra.mxu1 %v1141_v32 }
 0x138   :  { %650 = vmatprep.subr.bf16.mxu0 %v1148_v33  ;;  %691 = vmatprep.subr.bf16.mxu1 %v1153_v34 }
 0x13b   :  { %651 = vmatpush1.bf16.msra.mxu0 %v1162_v35  ;;  %692 = vmatpush1.bf16.msra.mxu1 %v1167_v36 }
 0x13c   :  { %652 = vmatprep.subr.bf16.mxu0 %v1174_v37  ;;  %693 = vmatprep.subr.bf16.mxu1 %v1179_v38 }
 0x13f   :  { %653 = vmatpush1.bf16.msra.mxu0 %v1186_v39  ;;  %694 = vmatpush1.bf16.msra.mxu1 %v1191_v40 }
 0x140   :  { %654 = vmatprep.subr.bf16.mxu0 %v1198_v41  ;;  %695 = vmatprep.subr.bf16.mxu1 %v1203_v42 }
 0x143   :  { %655 = vmatpush1.bf16.msra.mxu0 %v1210_v43  ;;  %696 = vmatpush1.bf16.msra.mxu1 %v1215_v44 }
 0x144   :  { %656 = vmatprep.subr.bf16.mxu0 %v1222_v45  ;;  %697 = vmatprep.subr.bf16.mxu1 %v1227_v46 }
 0x147   :  { %657 = vmatpush1.bf16.msra.mxu0 %v1234_v47  ;;  %698 = vmatpush1.bf16.msra.mxu1 %v1239_v48 }
 0x148   :  { %754 = vmatprep.subr.bf16.mxu0 %v1042_v11  ;;  %795 = vmatprep.subr.bf16.mxu1 %v1047_v16 }
 0x1fd   :  { %v564_v2 = vpop.f32.mrb[12].mxu0  ;;  %v605_v6 = vpop.f32.mrb[12].mxu1 }
 0x1fe   :  { %v612_v5 = vadd.f32 %v564_v2, %v1288_v1  ;;  %v614_v9 = vadd.f32 %v605_v6, %v1290_v3  ;;  %v566_v12 = vpop.f32.mrb[13].mxu0  ;;  %v607_v14 = vpop.f32.mrb[13].mxu1 }
 0x1ff   :  { %v613_v17 = vadd.f32 %v566_v12, %v1292_v7  ;;  %v615_v49 = vadd.f32 %v607_v14, %v1294_v8  ;;  %v568_v51 = vpop.f32.mrb[14].mxu0  ;;  %v609_v55 = vpop.f32.mrb[14].mxu1  ;;  %v1429_v14 = vld [vmem:[#allocation9_spill] sm:$0xff] }
 0x200   :  { %v616_v56 = vmul.f32 0.5, %v612_v5  ;;  %v569_v57 = vpop.f32.mrb[15].mxu0  ;;  %v610_v58 = vpop.f32.mrb[15].mxu1  ;;  %v618_v16 = vmul.f32 0.5, %v614_v9 }
 0x201   :  { %v617_v11 = vmul.f32 0.5, %v613_v17  ;;  %v1431_v57 = vld [vmem:[#allocation11_spill] sm:$0xff] }
 0x202   :  { %973 = vtanh.f32 %v616_v56 }
 0x203   :  { %975 = vtanh.f32 %v617_v11 }
 0x204   :  { %977 = vtanh.f32 %v615_v49  ;;  %v1430_v49 = vld [vmem:[#allocation10_spill] sm:$0xff] }
 0x205   :  { %979 = vtanh.f32 %v618_v16 }
 0x20c   :  { %v974_v59 = vpop.eup %973 }
 0x20d   :  { %v622_v1 = vmul.f32 0.5, %v974_v59  ;;  %v976_v60 = vpop.eup %975 }
 0x20e   :  { %v623_v61 = vmul.f32 0.5, %v976_v60  ;;  %v978_v62 = vpop.eup %977 }
 0x20f   :  { %v625_v3 = vadd.f32 0.5, %v622_v1  ;;  %v980_v4 = vpop.eup %979 }
 0x210   :  { %v626_v7 = vadd.f32 0.5, %v623_v61  ;;  %v624_v10 = vmul.f32 0.5, %v980_v4 }
 0x211   :  { %v630_v27 = vmul.f32 %v978_v62, %v625_v3 }
 0x212   :  { %v629_v8 = vmul.f32 %v626_v7, %v1312_v13  ;;  %v627_v52 = vadd.f32 0.5, %v624_v10 }
 0x214   :  { %v1357_v15 = vadd.f32 %v630_v27, %v629_v8 }
 0x216   :  { %981 = vtanh.f32 %v1357_v15 }
 0x220   :  { %v982_v53 = vpop.eup %981 }
 0x221   :  { %v633_v50 = vmul.f32 %v982_v53, %v627_v52 }
 0x223   :  { %v634_v54 = vpack.c.bf16 %v633_v50, %v633_v50 }
 0x225   :  { %907 = vst [vmem:[%s1414_s4 + $0x4] sm:$0xf] %v634_v54  ;;  %675 = vmatmul.mubr.bf16.vlgmr.msra.gmra.mrb[16].mxu0 %v634_v54  ;;  %716 = vmatmul.mubr.bf16.vlgmr.msra.gmra.mrb[16].mxu1 %v634_v54 }
 0x226   :  { %755 = vmatpush1.bf16.msra.mxu0 %v1055_v18  ;;  %796 = vmatpush1.bf16.msra.mxu1 %v1060_v19 }
 0x227   :  { %756 = vmatprep.subr.bf16.mxu0 %v1065_v20  ;;  %797 = vmatprep.subr.bf16.mxu1 %v1072_v21  ;;  %v1425_v20 = vld [vmem:[#allocation5_spill] sm:$0xff] }
 0x228   :  { %786 = vmatprep.mubr.bf16.mxu0 %v1424_v0  ;;  %827 = vmatprep.mubr.bf16.mxu1 %v1424_v0 }
 0x22a   :  { %757 = vmatpush1.bf16.msra.mxu0 %v1079_v22  ;;  %798 = vmatpush1.bf16.msra.mxu1 %v1084_v23  ;;  %v1426_v22 = vld [vmem:[#allocation6_spill] sm:$0xff] }
 0x22b   :  { %758 = vmatprep.subr.bf16.mxu0 %v1091_v24  ;;  %799 = vmatprep.subr.bf16.mxu1 %v1098_v25 }
 0x22e   :  { %759 = vmatpush1.bf16.msra.mxu0 %v1103_v26  ;;  %800 = vmatpush1.bf16.msra.mxu1 %v1115_v28  ;;  %v1427_v26 = vld [vmem:[#allocation7_spill] sm:$0xff] }
 0x22f   :  { %760 = vmatprep.subr.bf16.mxu0 %v1122_v29  ;;  %801 = vmatprep.subr.bf16.mxu1 %v1127_v30  ;;  %v1428_v29 = vld [vmem:[#allocation8_spill] sm:$0xff] }
 0x232   :  { %761 = vmatpush1.bf16.msra.mxu0 %v1136_v31  ;;  %802 = vmatpush1.bf16.msra.mxu1 %v1141_v32 }
 0x233   :  { %762 = vmatprep.subr.bf16.mxu0 %v1148_v33  ;;  %803 = vmatprep.subr.bf16.mxu1 %v1153_v34 }
 0x236   :  { %763 = vmatpush1.bf16.msra.mxu0 %v1162_v35  ;;  %804 = vmatpush1.bf16.msra.mxu1 %v1167_v36 }
 0x237   :  { %764 = vmatprep.subr.bf16.mxu0 %v1174_v37  ;;  %805 = vmatprep.subr.bf16.mxu1 %v1179_v38 }
 0x23a   :  { %765 = vmatpush1.bf16.msra.mxu0 %v1186_v39  ;;  %806 = vmatpush1.bf16.msra.mxu1 %v1191_v40 }
 0x23b   :  { %766 = vmatprep.subr.bf16.mxu0 %v1198_v41  ;;  %807 = vmatprep.subr.bf16.mxu1 %v1203_v42 }
 0x23e   :  { %767 = vmatpush1.bf16.msra.mxu0 %v1210_v43  ;;  %808 = vmatpush1.bf16.msra.mxu1 %v1215_v44 }
 0x23f   :  { %768 = vmatprep.subr.bf16.mxu0 %v1222_v45  ;;  %809 = vmatprep.subr.bf16.mxu1 %v1227_v46 }
 0x242   :  { %769 = vmatpush1.bf16.msra.mxu0 %v1234_v47  ;;  %810 = vmatpush1.bf16.msra.mxu1 %v1239_v48 }
 0x2f8   :  { %v676_v18 = vpop.f32.mrb[16].mxu0  ;;  %v717_v19 = vpop.f32.mrb[16].mxu1 }
 0x2f9   :  { %v724_v21 = vadd.f32 %v676_v18, %v1425_v20  ;;  %v726_v23 = vadd.f32 %v717_v19, %v1426_v22  ;;  %v678_v24 = vpop.f32.mrb[17].mxu0  ;;  %v719_v25 = vpop.f32.mrb[17].mxu1 }
 0x2fa   :  { %v725_v28 = vadd.f32 %v678_v24, %v1427_v26  ;;  %v727_v30 = vadd.f32 %v719_v25, %v1428_v29  ;;  %v680_v31 = vpop.f32.mrb[18].mxu0  ;;  %v721_v32 = vpop.f32.mrb[18].mxu1 }
 0x2fb   :  { %v728_v33 = vmul.f32 0.5, %v724_v21  ;;  %v681_v34 = vpop.f32.mrb[19].mxu0  ;;  %v722_v35 = vpop.f32.mrb[19].mxu1  ;;  %v730_v37 = vmul.f32 0.5, %v726_v23 }
 0x2fc   :  { %v729_v36 = vmul.f32 0.5, %v725_v28 }
 0x2fd   :  { %983 = vtanh.f32 %v728_v33 }
 0x2fe   :  { %985 = vtanh.f32 %v729_v36 }
 0x2ff   :  { %987 = vtanh.f32 %v727_v30 }
 0x300   :  { %989 = vtanh.f32 %v730_v37 }
 0x307   :  { %v984_v38 = vpop.eup %983 }
 0x308   :  { %v734_v39 = vmul.f32 0.5, %v984_v38  ;;  %v986_v40 = vpop.eup %985 }
 0x309   :  { %v735_v42 = vmul.f32 0.5, %v986_v40  ;;  %v988_v43 = vpop.eup %987 }
 0x30a   :  { %v737_v41 = vadd.f32 0.5, %v734_v39  ;;  %v990_v48 = vpop.eup %989 }
 0x30b   :  { %v738_v44 = vadd.f32 0.5, %v735_v42  ;;  %v736_v13 = vmul.f32 0.5, %v990_v48 }
 0x30c   :  { %v742_v45 = vmul.f32 %v988_v43, %v737_v41 }
 0x30d   :  { %v741_v46 = vmul.f32 %v738_v44, %v1357_v15  ;;  %v739_v0 = vadd.f32 0.5, %v736_v13 }
 0x30f   :  { %v743_v47 = vadd.f32 %v742_v45, %v741_v46 }
 0x311   :  { %991 = vtanh.f32 %v743_v47 }
 0x31b   :  { %v992_v2 = vpop.eup %991 }
 0x31c   :  { %v745_v6 = vmul.f32 %v992_v2, %v739_v0 }
 0x31e   :  { %v746_v5 = vpack.c.bf16 %v745_v6, %v745_v6 }
 0x320   :  { %908 = vst [vmem:[%s1414_s4 + $0x8] sm:$0xf] %v746_v5  ;;  %787 = vmatmul.mubr.bf16.vlgmr.msra.gmra.mrb[20].mxu0 %v746_v5  ;;  %828 = vmatmul.mubr.bf16.vlgmr.msra.gmra.mrb[20].mxu1 %v746_v5 }
 0x3f3   :  { %v788_v9 = vpop.f32.mrb[20].mxu0  ;;  %v829_v12 = vpop.f32.mrb[20].mxu1 }
 0x3f4   :  { %v836_v17 = vadd.f32 %v788_v9, %v1429_v14  ;;  %v838_v51 = vadd.f32 %v829_v12, %v1430_v49  ;;  %v790_v55 = vpop.f32.mrb[21].mxu0  ;;  %v831_v56 = vpop.f32.mrb[21].mxu1 }
 0x3f5   :  { %v837_v58 = vadd.f32 %v790_v55, %v1431_v57  ;;  %v839_v11 = vadd.f32 %v831_v56, %v1310_v63  ;;  %v792_v16 = vpop.f32.mrb[22].mxu0  ;;  %v833_v59 = vpop.f32.mrb[22].mxu1 }
 0x3f6   :  { %v840_v1 = vmul.f32 0.5, %v836_v17  ;;  %v793_v60 = vpop.f32.mrb[23].mxu0  ;;  %v834_v3 = vpop.f32.mrb[23].mxu1  ;;  %v842_v62 = vmul.f32 0.5, %v838_v51 }
 0x3f7   :  { %v841_v61 = vmul.f32 0.5, %v837_v58 }
 0x3f8   :  { %993 = vtanh.f32 %v840_v1 }
 0x3f9   :  { %995 = vtanh.f32 %v841_v61 }
 0x3fa   :  { %997 = vtanh.f32 %v839_v11 }
 0x3fb   :  { %999 = vtanh.f32 %v842_v62 }
 0x402   :  { %v994_v7 = vpop.eup %993 }
 0x403   :  { %v846_v27 = vmul.f32 0.5, %v994_v7  ;;  %v996_v8 = vpop.eup %995 }
 0x404   :  { %v847_v4 = vmul.f32 0.5, %v996_v8  ;;  %v998_v10 = vpop.eup %997 }
 0x405   :  { %v849_v15 = vadd.f32 0.5, %v846_v27  ;;  %v1000_v54 = vpop.eup %999 }
 0x406   :  { %v850_v52 = vadd.f32 0.5, %v847_v4  ;;  %v848_v18 = vmul.f32 0.5, %v1000_v54 }
 0x407   :  { %v854_v53 = vmul.f32 %v998_v10, %v849_v15 }
 0x408   :  { %v853_v63 = vmul.f32 %v850_v52, %v743_v47  ;;  %v851_v19 = vadd.f32 0.5, %v848_v18 }
 0x40a   :  { %v855_v50 = vadd.f32 %v854_v53, %v853_v63 }
 0x40c   :  { %1001 = vtanh.f32 %v855_v50 }
 0x416   :  { %v1002_v20 = vpop.eup %1001 }
 0x417   :  { %v857_v21 = vmul.f32 %v1002_v20, %v851_v19 }
 0x419   :  { %v858_v22 = vpack.c.bf16 %v857_v21, %v857_v21 }
 0x41b   :  { %909 = vst [vmem:[%s1414_s4 + $0xc] sm:$0xf] %v858_v22  ;;  %861 = vst [vmem:[#allocation2] sm:$0xf] %v858_v22 }

// kernel: msslstm_forward.2
= control target key start
LH: loop header
LB: loop body
LE: loop exit
PB: predicated region body
PF: predicated region fallthrough
CT: control target
= control target key end

     0   :  { %9 = vsyncpa [#allocation6], 0  ;;  %s1653_s15 = smov [#allocation5]   ;;  %s2260_s0 = inlined_call_operand.vmem [shape: bf16[8,8,4], index: 0, kind: input, shape index: {}]   ;;  %s2261_s1 = inlined_call_operand.vmem [shape: bf16[4,512], index: 1, kind: input, shape index: {}]   ;;  %s2262_s2 = inlined_call_operand.hbm [shape: bf16[128,512], index: 2, kind: input, shape index: {}]   ;;  %s2263_s3 = inlined_call_operand.vmem [shape: f32[1,512], index: 3, kind: input, shape index: {}]   ;;  %s2264_s4 = inlined_call_operand.vmem [shape: bf16[8,8,128], index: 4, kind: output, shape index: {}]  }
   0x1   :  { %s19_s16 = sshll.u32 %s1653_s15, 4  ;;  %s1629_s19 = scalar_lea.hbm %s2262_s2, 4096  ;;  %s20_s16 = int_to_ptr.vmem [resolvable:$true] %s19_s16 }
   0x2   :  { %p1630_p0 = scmp.ne.s32.totalorder %s2262_s2, %s1629_s19  ;;  %p1633_p1 = scmp.lt.u32.totalorder %s1629_s19, %s2262_s2 }
   0x4   :  { %p1635_p2 = pnand %p1633_p1, %p1630_p0 }
   0x6   :  { %1638 = shalt.err (!%p1635_p2)
}
   0x7   :  { %s1639_s24 = scalar_lea.vmem %s20_s16, 4096  ;;  %p1644_p4 = scmp.lt.s32.totalorder %s20_s16, %s20_s16 }
   0x8   :  { %p1640_p3 = scmp.ne.s32.totalorder %s20_s16, %s1639_s24  ;;  %p1645_p5 = scmp.lt.s32.totalorder %s1639_s24, %s1639_s24 }
   0xa   :  { %p1646_p6 = por %p1645_p5, %p1644_p4 }
   0xc   :  { %p1647_p7 = pnand %p1646_p6, %p1640_p3 }
   0xe   :  { %1650 = shalt.err (!%p1647_p7)
}
   0xf   :  { %s1654_s25 = smov 256   ;;  %s1655_s26 = smov 16  }
  0x10   :  { %25 = dma.hbm_to_vmem [thread:$0]  %s2262_s2, 4096, %s20_s16, [#allocation6], %s1654_s25, %s1654_s25, %s1655_s26  }
  0x11   :  { %1651 = dma.done.wait [#allocation6], 4096  }
  0x12   :  { %1652 = vsyncadd [#allocation6], 4294963200  ;;  %v49_v0 = vlaneseq  ;;  %v1656_v1 = vmov 1983009808   ;;  %v2265_v3 = vmov 0   ;;  %v46_v7 = vld [vmem:[%s2261_s1] sm:$0xff] }
  0x13   :  { %v92_v2 = vunpack.c.l.s4 %v1656_v1  ;;  %165 = vmatprep.mubr.bf16.mxu0 %v2265_v3  ;;  %36 = vst [vmem:[#allocation2] sm:$0xf] %v2265_v3  ;;  %238 = vmatprep.mubr.bf16.mxu1 %v2265_v3  ;;  %vm120_vm0 = vcmask 1041408   ;;  %v90_v9 = vcombine.high %v46_v7, %v46_v7  ;;  %v1704_v13 = vld [vmem:[#allocation5 + $0x4] ss:$16 sps:$4 sm:$0xff]   ;;  %v1465_v14 = vld [vmem:[%s2260_s0] sm:$0xff]  }
  0x14   :  { %v1698_v4 = vshrl.u32 %v49_v0, 7  ;;  %v1709_v17 = vld [vmem:[#allocation5 + $0xc] ss:$16 sps:$4 sm:$0xff]   ;;  %vm107_vm1 = vcmask 31744   ;;  %v1711_v18 = vld [vmem:[#allocation5] ss:$16 sps:$4 sm:$0xff]  }
  0x15   :  { %v93_v5 = vunpack.c.0.s8 %v92_v2  ;;  %v1714_v19 = vld [vmem:[#allocation5 + $0x24] ss:$16 sps:$4 sm:$0xff]   ;;  %v1716_v20 = vld [vmem:[#allocation5 + $0x8] ss:$16 sps:$4 sm:$0xff]   ;;  %v1720_v21 = vld [vmem:[#allocation5 + $0x2c] ss:$16 sps:$4 sm:$0xff]  }
  0x16   :  { %v1723_v22 = vld [vmem:[#allocation5 + $0x20] ss:$16 sps:$4 sm:$0xff]   ;;  %v1728_v23 = vld [vmem:[#allocation5 + $0x44] ss:$16 sps:$4 sm:$0xff]   ;;  %v1731_v24 = vld [vmem:[#allocation5 + $0x28] ss:$16 sps:$4 sm:$0xff]  }
  0x17   :  { %v96_v6 = vsub.s32 %v93_v5, %v1698_v4  ;;  %v1478_v25 = vld [vmem:[%s2260_s0 + $0x8] sm:$0xff]   ;;  %v1738_v26 = vld [vmem:[#allocation5 + $0x4c] ss:$16 sps:$4 sm:$0xff]   ;;  %v1741_v27 = vld [vmem:[#allocation5 + $0x40] ss:$16 sps:$4 sm:$0xff]   ;;  %v51_v52 = vsub.s32 0, %v1698_v4 }
  0x18   :  { %v1744_v28 = vld [vmem:[#allocation5 + $0x64] ss:$16 sps:$4 sm:$0xff]   ;;  %v1747_v29 = vld [vmem:[#allocation5 + $0x48] ss:$16 sps:$4 sm:$0xff]   ;;  %v1751_v30 = vld [vmem:[#allocation5 + $0x6c] ss:$16 sps:$4 sm:$0xff]  }
  0x19   :  { %v97_v8 = vrot.slane %v46_v7, %v96_v6  ;;  %v104_v12 = vrot.slane %v90_v9, %v96_v6  ;;  %v1754_v31 = vld [vmem:[#allocation5 + $0x60] ss:$16 sps:$4 sm:$0xff]   ;;  %v1759_v32 = vld [vmem:[#allocation5 + $0x84] ss:$16 sps:$4 sm:$0xff]   ;;  %v1762_v33 = vld [vmem:[#allocation5 + $0x68] ss:$16 sps:$4 sm:$0xff]  }
  0x1a   :  { %v1491_v34 = vld [vmem:[%s2260_s0 + $0x10] sm:$0xff]   ;;  %v1775_v37 = vld [vmem:[#allocation5 + $0xa4] ss:$16 sps:$4 sm:$0xff]   ;;  %v1778_v38 = vld [vmem:[#allocation5 + $0x88] ss:$16 sps:$4 sm:$0xff]   ;;  %v59_v53 = vsub.s32 2, %v1698_v4 }
  0x1b   :  { %v105_v10 = vcombine.high %v97_v8, %v97_v8  ;;  %v122_v11 = vsel %vm120_vm0, %v97_v8, 0  ;;  %v106_v15 = vcombine.high %v104_v12, %v104_v12  ;;  %v128_v16 = vsel %vm120_vm0, %v104_v12, 0  ;;  %v1769_v35 = vld [vmem:[#allocation5 + $0x8c] ss:$16 sps:$4 sm:$0xff]   ;;  %v1772_v36 = vld [vmem:[#allocation5 + $0x80] ss:$16 sps:$4 sm:$0xff]  }
  0x1c   :  { %v1782_v39 = vld [vmem:[#allocation5 + $0xac] ss:$16 sps:$4 sm:$0xff]   ;;  %v1785_v40 = vld [vmem:[#allocation5 + $0xa0] ss:$16 sps:$4 sm:$0xff]   ;;  %v1790_v41 = vld [vmem:[#allocation5 + $0xc4] ss:$16 sps:$4 sm:$0xff]  }
  0x1d   :  { %1410 = vmatprep.subr.msk.bf16.mxu0 %vm120_vm0, %v105_v10  ;;  %1415 = vmatprep.subr.msk.bf16.mxu1 %vm120_vm0, %v106_v15  ;;  %v1793_v42 = vld [vmem:[#allocation5 + $0xa8] ss:$16 sps:$4 sm:$0xff]   ;;  %v1800_v44 = vld [vmem:[#allocation5 + $0xcc] ss:$16 sps:$4 sm:$0xff]   ;;  %v1803_v45 = vld [vmem:[#allocation5 + $0xc0] ss:$16 sps:$4 sm:$0xff]  }
  0x1e   :  { %134 = vmatpush1.bf16.msra.mxu0 %v122_v11  ;;  %207 = vmatpush1.bf16.msra.mxu1 %v128_v16  ;;  %v1504_v43 = vld [vmem:[%s2260_s0 + $0x18] sm:$0xff]   ;;  %v1813_v48 = vld [vmem:[#allocation5 + $0xec] ss:$16 sps:$4 sm:$0xff]   ;;  %v1816_v49 = vld [vmem:[#allocation5 + $0xe0] ss:$16 sps:$4 sm:$0xff]   ;;  %v55_v55 = vsub.s32 1, %v1698_v4 }
  0x1f   :  { %509 = vmatprep.subr.bf16.mxu0 %v1704_v13  ;;  %550 = vmatprep.subr.bf16.mxu1 %v1709_v17  ;;  %v1806_v46 = vld [vmem:[#allocation5 + $0xe4] ss:$16 sps:$4 sm:$0xff]   ;;  %v1809_v47 = vld [vmem:[#allocation5 + $0xc8] ss:$16 sps:$4 sm:$0xff]   ;;  %v343_v51 = vld [vmem:[#allocation2] sm:$0xf] }
  0x20   :  { %v1822_v50 = vld [vmem:[#allocation5 + $0xe8] ss:$16 sps:$4 sm:$0xff]   ;;  %v47_v54 = vld [vmem:[%s2263_s3] sm:$0xf]  ;;  %v63_v56 = vsub.s32 3, %v1698_v4 }
  0x21   :  { %1411 = vmatmul.mubr.msk.bf16.vlgmr.msra.gmra.mrb[0].mxu0 %vm107_vm1, %v1465_v14  ;;  %1416 = vmatmul.mubr.msk.bf16.vlgmr.msra.gmra.mrb[0].mxu1 %vm107_vm1, %v1465_v14  ;;  %v1873_v58 = vrot.slane %v47_v54, %v51_v52  ;;  %v1877_v60 = vrot.slane %v47_v54, %v59_v53  ;;  %v56_v61 = vrot.slane %v47_v54, %v55_v55 }
  0x22   :  { %510 = vmatpush1.bf16.msra.mxu0 %v1711_v18  ;;  %175 = vmatprep.mubr.bf16.mxu0 %v2265_v3  ;;  %v1879_v0 = vrot.slane %v47_v54, %v63_v56 }
  0x23   :  { %511 = vmatprep.subr.bf16.mxu0 %v1714_v19  ;;  %551 = vmatpush1.bf16.msra.mxu1 %v1716_v20 }
  0x24   :  { %248 = vmatprep.mubr.bf16.mxu1 %v2265_v3  ;;  %552 = vmatprep.subr.bf16.mxu1 %v1720_v21 }
  0x26   :  { %512 = vmatpush1.bf16.msra.mxu0 %v1723_v22 }
  0x27   :  { %513 = vmatprep.subr.bf16.mxu0 %v1728_v23  ;;  %553 = vmatpush1.bf16.msra.mxu1 %v1731_v24 }
  0x28   :  { %554 = vmatprep.subr.bf16.mxu1 %v1738_v26 }
  0x29   :  { %1412 = vmatmul.mubr.msk.bf16.gmra.mrb[4].mxu0 %vm107_vm1, %v1478_v25  ;;  %1417 = vmatmul.mubr.msk.bf16.gmra.mrb[4].mxu1 %vm107_vm1, %v1478_v25 }
  0x2a   :  { %514 = vmatpush1.bf16.msra.mxu0 %v1741_v27  ;;  %185 = vmatprep.mubr.bf16.mxu0 %v2265_v3 }
  0x2b   :  { %515 = vmatprep.subr.bf16.mxu0 %v1744_v28  ;;  %555 = vmatpush1.bf16.msra.mxu1 %v1747_v29 }
  0x2c   :  { %258 = vmatprep.mubr.bf16.mxu1 %v2265_v3  ;;  %556 = vmatprep.subr.bf16.mxu1 %v1751_v30 }
  0x2e   :  { %516 = vmatpush1.bf16.msra.mxu0 %v1754_v31 }
  0x2f   :  { %517 = vmatprep.subr.bf16.mxu0 %v1759_v32  ;;  %557 = vmatpush1.bf16.msra.mxu1 %v1762_v33 }
  0x30   :  { %558 = vmatprep.subr.bf16.mxu1 %v1769_v35 }
  0x31   :  { %1413 = vmatmul.mubr.msk.bf16.gmra.mrb[8].mxu0 %vm107_vm1, %v1491_v34  ;;  %1418 = vmatmul.mubr.msk.bf16.gmra.mrb[8].mxu1 %vm107_vm1, %v1491_v34 }
  0x32   :  { %518 = vmatpush1.bf16.msra.mxu0 %v1772_v36  ;;  %195 = vmatprep.mubr.bf16.mxu0 %v2265_v3 }
  0x33   :  { %519 = vmatprep.subr.bf16.mxu0 %v1775_v37  ;;  %559 = vmatpush1.bf16.msra.mxu1 %v1778_v38 }
  0x34   :  { %268 = vmatprep.mubr.bf16.mxu1 %v2265_v3  ;;  %560 = vmatprep.subr.bf16.mxu1 %v1782_v39 }
  0x36   :  { %520 = vmatpush1.bf16.msra.mxu0 %v1785_v40 }
  0x37   :  { %521 = vmatprep.subr.bf16.mxu0 %v1790_v41  ;;  %561 = vmatpush1.bf16.msra.mxu1 %v1793_v42 }
  0x38   :  { %562 = vmatprep.subr.bf16.mxu1 %v1800_v44 }
  0x39   :  { %1414 = vmatmul.mubr.msk.bf16.gmra.mrb[12].mxu0 %vm107_vm1, %v1504_v43  ;;  %1419 = vmatmul.mubr.msk.bf16.gmra.mrb[12].mxu1 %vm107_vm1, %v1504_v43 }
  0x3a   :  { %522 = vmatpush1.bf16.msra.mxu0 %v1803_v45  ;;  %541 = vmatprep.mubr.bf16.mxu0 %v2265_v3 }
  0x3b   :  { %523 = vmatprep.subr.bf16.mxu0 %v1806_v46  ;;  %563 = vmatpush1.bf16.msra.mxu1 %v1809_v47 }
  0x3c   :  { %582 = vmatprep.mubr.bf16.mxu1 %v2265_v3  ;;  %564 = vmatprep.subr.bf16.mxu1 %v1813_v48 }
  0x3e   :  { %524 = vmatpush1.bf16.msra.mxu0 %v1816_v49 }
  0x3f   :  { %620 = vmatprep.subr.bf16.mxu0 %v1704_v13  ;;  %565 = vmatpush1.bf16.msra.mxu1 %v1822_v50 }
  0x40   :  { %661 = vmatprep.subr.bf16.mxu1 %v1709_v17 }
  0x41   :  { %542 = vmatmul.mubr.bf16.vlgmr.msra.gmra.mrb[16].mxu0 %v343_v51 }
  0x42   :  { %621 = vmatpush1.bf16.msra.mxu0 %v1711_v18  ;;  %652 = vmatprep.mubr.bf16.mxu0 %v2265_v3 }
  0x43   :  { %583 = vmatmul.mubr.bf16.vlgmr.msra.gmra.mrb[16].mxu1 %v343_v51  ;;  %622 = vmatprep.subr.bf16.mxu0 %v1714_v19 }
  0x44   :  { %662 = vmatpush1.bf16.msra.mxu1 %v1716_v20  ;;  %693 = vmatprep.mubr.bf16.mxu1 %v2265_v3 }
  0x45   :  { %663 = vmatprep.subr.bf16.mxu1 %v1720_v21 }
  0x46   :  { %623 = vmatpush1.bf16.msra.mxu0 %v1723_v22 }
  0x47   :  { %624 = vmatprep.subr.bf16.mxu0 %v1728_v23 }
  0x48   :  { %664 = vmatpush1.bf16.msra.mxu1 %v1731_v24 }
  0x49   :  { %665 = vmatprep.subr.bf16.mxu1 %v1738_v26 }
  0x4a   :  { %625 = vmatpush1.bf16.msra.mxu0 %v1741_v27 }
  0x4b   :  { %626 = vmatprep.subr.bf16.mxu0 %v1744_v28 }
  0x4c   :  { %666 = vmatpush1.bf16.msra.mxu1 %v1747_v29 }
  0x4d   :  { %667 = vmatprep.subr.bf16.mxu1 %v1751_v30 }
  0x4e   :  { %627 = vmatpush1.bf16.msra.mxu0 %v1754_v31 }
  0x4f   :  { %628 = vmatprep.subr.bf16.mxu0 %v1759_v32 }
  0x50   :  { %668 = vmatpush1.bf16.msra.mxu1 %v1762_v33 }
  0x51   :  { %669 = vmatprep.subr.bf16.mxu1 %v1769_v35 }
  0x52   :  { %629 = vmatpush1.bf16.msra.mxu0 %v1772_v36 }
  0x53   :  { %630 = vmatprep.subr.bf16.mxu0 %v1775_v37 }
  0x54   :  { %670 = vmatpush1.bf16.msra.mxu1 %v1778_v38 }
  0x55   :  { %671 = vmatprep.subr.bf16.mxu1 %v1782_v39 }
  0x56   :  { %631 = vmatpush1.bf16.msra.mxu0 %v1785_v40 }
  0x57   :  { %632 = vmatprep.subr.bf16.mxu0 %v1790_v41 }
  0x58   :  { %672 = vmatpush1.bf16.msra.mxu1 %v1793_v42 }
  0x59   :  { %673 = vmatprep.subr.bf16.mxu1 %v1800_v44 }
  0x5a   :  { %633 = vmatpush1.bf16.msra.mxu0 %v1803_v45 }
  0x5b   :  { %634 = vmatprep.subr.bf16.mxu0 %v1806_v46 }
  0x5c   :  { %674 = vmatpush1.bf16.msra.mxu1 %v1809_v47 }
  0x5d   :  { %675 = vmatprep.subr.bf16.mxu1 %v1813_v48 }
  0x5e   :  { %635 = vmatpush1.bf16.msra.mxu0 %v1816_v49 }
  0x5f   :  { %732 = vmatprep.subr.bf16.mxu0 %v1704_v13 }
  0x60   :  { %676 = vmatpush1.bf16.msra.mxu1 %v1822_v50 }
  0x61   :  { %773 = vmatprep.subr.bf16.mxu1 %v1709_v17 }
  0xf4   :  { %v1871_v57 = vpop.f32.mrb[0].mxu0  ;;  %v240_v63 = vpop.f32.mrb[0].mxu1 }
  0xf5   :  { %v1875_v59 = vpop.f32.mrb[1].mxu0  ;;  %v242_v5 = vpop.f32.mrb[1].mxu1 }
  0xf6   :  { %v171_v62 = vpop.f32.mrb[2].mxu0  ;;  %v244_v4 = vpop.f32.mrb[2].mxu1 }
  0xf7   :  { %v1882_v1 = vadd.f32 %v171_v62, %v1873_v58  ;;  %v173_v2 = vpop.f32.mrb[3].mxu0  ;;  %v1887_v7 = vadd.f32 %v244_v4, %v1877_v60  ;;  %v246_v8 = vpop.f32.mrb[3].mxu1 }
  0xf8   :  { %v1884_v6 = vadd.f32 %v173_v2, %v56_v61  ;;  %v1890_v9 = vadd.f32 %v246_v8, %v1879_v0 }
  0xfc   :  { %v177_v10 = vpop.f32.mrb[4].mxu0  ;;  %v250_v16 = vpop.f32.mrb[4].mxu1 }
  0xfd   :  { %v1893_v11 = vadd.f32 %v177_v10, %v1873_v58  ;;  %v179_v12 = vpop.f32.mrb[5].mxu0  ;;  %v1901_v43 = vadd.f32 %v250_v16, %v1877_v60  ;;  %v252_v51 = vpop.f32.mrb[5].mxu1 }
  0xfe   :  { %v1895_v14 = vadd.f32 %v179_v12, %v56_v61  ;;  %v181_v15 = vpop.f32.mrb[6].mxu0  ;;  %v1906_v53 = vadd.f32 %v252_v51, %v1879_v0  ;;  %v254_v54 = vpop.f32.mrb[6].mxu1 }
  0xff   :  { %v1898_v25 = vadd.f32 %v181_v15, %v1873_v58  ;;  %v183_v34 = vpop.f32.mrb[7].mxu0  ;;  %v1909_v55 = vadd.f32 %v254_v54, %v1877_v60  ;;  %v256_v56 = vpop.f32.mrb[7].mxu1 }
 0x100   :  { %v1903_v52 = vadd.f32 %v183_v34, %v56_v61  ;;  %2269 = vst [vmem:[#allocation10_spill] sm:$0xff] %v1906_v53  ;;  %v1912_v62 = vadd.f32 %v256_v56, %v1879_v0 }
 0x101   :  { %2267 = vst [vmem:[#allocation8_spill] sm:$0xff] %v1898_v25  ;;  %2270 = vst [vmem:[#allocation11_spill] sm:$0xff] %v1909_v55 }
 0x102   :  { %2268 = vst [vmem:[#allocation9_spill] sm:$0xff] %v1903_v52  ;;  %2271 = vst [vmem:[#allocation12_spill] sm:$0xff] %v1912_v62 }
 0x104   :  { %v187_v2 = vpop.f32.mrb[8].mxu0  ;;  %v260_v15 = vpop.f32.mrb[8].mxu1 }
 0x105   :  { %v1915_v4 = vadd.f32 %v187_v2, %v1873_v58  ;;  %v189_v8 = vpop.f32.mrb[9].mxu0  ;;  %v1923_v51 = vadd.f32 %v260_v15, %v1877_v60  ;;  %v262_v54 = vpop.f32.mrb[9].mxu1 }
 0x106   :  { %v1917_v10 = vadd.f32 %v189_v8, %v56_v61  ;;  %v191_v12 = vpop.f32.mrb[10].mxu0  ;;  %v1928_v56 = vadd.f32 %v262_v54, %v1879_v0  ;;  %v264_v2 = vpop.f32.mrb[10].mxu1 }
 0x107   :  { %2272 = vst [vmem:[#allocation13_spill] sm:$0xff] %v1915_v4  ;;  %v1920_v16 = vadd.f32 %v191_v12, %v1873_v58  ;;  %v193_v34 = vpop.f32.mrb[11].mxu0  ;;  %2275 = vst [vmem:[#allocation16_spill] sm:$0xff] %v1923_v51  ;;  %v1931_v4 = vadd.f32 %v264_v2, %v1877_v60  ;;  %v266_v8 = vpop.f32.mrb[11].mxu1 }
 0x108   :  { %2273 = vst [vmem:[#allocation14_spill] sm:$0xff] %v1917_v10  ;;  %v1925_v3 = vadd.f32 %v193_v34, %v56_v61  ;;  %2277 = vst [vmem:[#allocation18_spill] sm:$0xff] %v1928_v56  ;;  %v1934_v10 = vadd.f32 %v266_v8, %v1879_v0 }
 0x109   :  { %2274 = vst [vmem:[#allocation15_spill] sm:$0xff] %v1920_v16  ;;  %2278 = vst [vmem:[#allocation19_spill] sm:$0xff] %v1931_v4 }
 0x10a   :  { %2276 = vst [vmem:[#allocation17_spill] sm:$0xff] %v1925_v3  ;;  %2279 = vst [vmem:[#allocation20_spill] sm:$0xff] %v1934_v10 }
 0x10c   :  { %v197_v12 = vpop.f32.mrb[12].mxu0  ;;  %v270_v3 = vpop.f32.mrb[12].mxu1 }
 0x10d   :  { %v1937_v16 = vadd.f32 %v197_v12, %v1873_v58  ;;  %v199_v15 = vpop.f32.mrb[13].mxu0  ;;  %v1945_v2 = vadd.f32 %v270_v3, %v1877_v60  ;;  %v272_v4 = vpop.f32.mrb[13].mxu1  ;;  %v170_v3 = vadd.f32 %v1875_v59, %v56_v61 }
 0x10e   :  { %v1939_v51 = vadd.f32 %v199_v15, %v56_v61  ;;  %v201_v34 = vpop.f32.mrb[14].mxu0  ;;  %v1950_v8 = vadd.f32 %v272_v4, %v1879_v0  ;;  %v274_v12 = vpop.f32.mrb[14].mxu1  ;;  %v243_v4 = vadd.f32 %v242_v5, %v1879_v0 }
 0x10f   :  { %2280 = vst [vmem:[#allocation21_spill] sm:$0xff] %v1937_v16  ;;  %v1942_v54 = vadd.f32 %v201_v34, %v1873_v58  ;;  %v203_v56 = vpop.f32.mrb[15].mxu0  ;;  %2283 = vst [vmem:[#allocation24_spill] sm:$0xff] %v1945_v2  ;;  %v1953_v16 = vadd.f32 %v274_v12, %v1877_v60  ;;  %v276_v15 = vpop.f32.mrb[15].mxu1  ;;  %v168_v34 = vadd.f32 %v1871_v57, %v1873_v58 }
 0x110   :  { %2281 = vst [vmem:[#allocation22_spill] sm:$0xff] %v1939_v51  ;;  %v1947_v62 = vadd.f32 %v203_v56, %v56_v61  ;;  %2285 = vst [vmem:[#allocation26_spill] sm:$0xff] %v1950_v8  ;;  %v1956_v51 = vadd.f32 %v276_v15, %v1879_v0  ;;  %v241_v56 = vadd.f32 %v240_v63, %v1877_v60 }
 0x111   :  { %2282 = vst [vmem:[#allocation23_spill] sm:$0xff] %v1942_v54  ;;  %2286 = vst [vmem:[#allocation27_spill] sm:$0xff] %v1953_v16 }
 0x112   :  { %2284 = vst [vmem:[#allocation25_spill] sm:$0xff] %v1947_v62  ;;  %2287 = vst [vmem:[#allocation28_spill] sm:$0xff] %v1956_v51 }
 0x114   :  { %v543_v54 = vpop.f32.mrb[16].mxu0 }
 0x115   :  { %v591_v62 = vadd.f32 %v543_v54, %v168_v34  ;;  %v545_v2 = vpop.f32.mrb[17].mxu0 }
 0x116   :  { %v592_v8 = vadd.f32 %v545_v2, %v170_v3  ;;  %v547_v10 = vpop.f32.mrb[18].mxu0  ;;  %v584_v12 = vpop.f32.mrb[16].mxu1 }
 0x117   :  { %v595_v16 = vmul.f32 0.5, %v591_v62  ;;  %v593_v52 = vadd.f32 %v584_v12, %v241_v56  ;;  %v548_v55 = vpop.f32.mrb[19].mxu0  ;;  %v586_v15 = vpop.f32.mrb[17].mxu1 }
 0x118   :  { %v596_v51 = vmul.f32 0.5, %v592_v8  ;;  %v594_v25 = vadd.f32 %v586_v15, %v243_v4  ;;  %v588_v53 = vpop.f32.mrb[18].mxu1  ;;  %v2288_v8 = vmov 0  }
 0x119   :  { %1517 = vtanh.f32 %v595_v16  ;;  %v589_v57 = vpop.f32.mrb[19].mxu1  ;;  %v597_v58 = vmul.f32 0.5, %v593_v52 }
 0x11a   :  { %1519 = vtanh.f32 %v596_v51 }
 0x11b   :  { %1521 = vtanh.f32 %v594_v25 }
 0x11c   :  { %1523 = vtanh.f32 %v597_v58 }
 0x123   :  { %v1518_v59 = vpop.eup %1517 }
 0x124   :  { %v1520_v60 = vpop.eup %1519  ;;  %v601_v61 = vmul.f32 0.5, %v1518_v59 }
 0x125   :  { %v602_v63 = vmul.f32 0.5, %v1520_v60  ;;  %v1522_v5 = vpop.eup %1521 }
 0x126   :  { %v604_v0 = vadd.f32 0.5, %v601_v61  ;;  %v1524_v53 = vpop.eup %1523 }
 0x127   :  { %v605_v10 = vadd.f32 0.5, %v602_v63  ;;  %v603_v16 = vmul.f32 0.5, %v1524_v53 }
 0x128   :  { %v609_v62 = vmul.f32 %v1522_v5, %v604_v0 }
 0x129   :  { %v608_v54 = vmul.f32 0.0, %v605_v10  ;;  %v606_v2 = vadd.f32 0.5, %v603_v16 }
 0x12b   :  { %v1963_v55 = vadd.f32 %v609_v62, %v608_v54 }
 0x12d   :  { %1525 = vtanh.f32 %v1963_v55 }
 0x137   :  { %v1526_v51 = vpop.eup %1525 }
 0x138   :  { %v612_v25 = vmul.f32 %v1526_v51, %v606_v2 }
 0x13a   :  { %v613_v52 = vpack.c.bf16 %v612_v25, %v612_v25 }
 0x13c   :  { %614 = vst [vmem:[%s2264_s4] sm:$0xf] %v613_v52  ;;  %653 = vmatmul.mubr.bf16.vlgmr.msra.gmra.mrb[20].mxu0 %v613_v52  ;;  %694 = vmatmul.mubr.bf16.vlgmr.msra.gmra.mrb[20].mxu1 %v613_v52 }
 0x13d   :  { %733 = vmatpush1.bf16.msra.mxu0 %v1711_v18  ;;  %774 = vmatpush1.bf16.msra.mxu1 %v1716_v20 }
 0x13e   :  { %734 = vmatprep.subr.bf16.mxu0 %v1714_v19  ;;  %775 = vmatprep.subr.bf16.mxu1 %v1720_v21 }
 0x13f   :  { %764 = vmatprep.mubr.bf16.mxu0 %v2288_v8  ;;  %805 = vmatprep.mubr.bf16.mxu1 %v2288_v8 }
 0x141   :  { %735 = vmatpush1.bf16.msra.mxu0 %v1723_v22  ;;  %776 = vmatpush1.bf16.msra.mxu1 %v1731_v24 }
 0x142   :  { %736 = vmatprep.subr.bf16.mxu0 %v1728_v23  ;;  %777 = vmatprep.subr.bf16.mxu1 %v1738_v26 }
 0x145   :  { %737 = vmatpush1.bf16.msra.mxu0 %v1741_v27  ;;  %778 = vmatpush1.bf16.msra.mxu1 %v1747_v29 }
 0x146   :  { %738 = vmatprep.subr.bf16.mxu0 %v1744_v28  ;;  %779 = vmatprep.subr.bf16.mxu1 %v1751_v30 }
 0x149   :  { %739 = vmatpush1.bf16.msra.mxu0 %v1754_v31  ;;  %780 = vmatpush1.bf16.msra.mxu1 %v1762_v33 }
 0x14a   :  { %740 = vmatprep.subr.bf16.mxu0 %v1759_v32  ;;  %781 = vmatprep.subr.bf16.mxu1 %v1769_v35 }
 0x14d   :  { %741 = vmatpush1.bf16.msra.mxu0 %v1772_v36  ;;  %782 = vmatpush1.bf16.msra.mxu1 %v1778_v38 }
 0x14e   :  { %742 = vmatprep.subr.bf16.mxu0 %v1775_v37  ;;  %783 = vmatprep.subr.bf16.mxu1 %v1782_v39 }
 0x151   :  { %743 = vmatpush1.bf16.msra.mxu0 %v1785_v40  ;;  %784 = vmatpush1.bf16.msra.mxu1 %v1793_v42 }
 0x152   :  { %744 = vmatprep.subr.bf16.mxu0 %v1790_v41  ;;  %785 = vmatprep.subr.bf16.mxu1 %v1800_v44 }
 0x155   :  { %745 = vmatpush1.bf16.msra.mxu0 %v1803_v45  ;;  %786 = vmatpush1.bf16.msra.mxu1 %v1809_v47 }
 0x156   :  { %746 = vmatprep.subr.bf16.mxu0 %v1806_v46  ;;  %787 = vmatprep.subr.bf16.mxu1 %v1813_v48 }
 0x159   :  { %747 = vmatpush1.bf16.msra.mxu0 %v1816_v49  ;;  %788 = vmatpush1.bf16.msra.mxu1 %v1822_v50 }
 0x15a   :  { %844 = vmatprep.subr.bf16.mxu0 %v1704_v13  ;;  %885 = vmatprep.subr.bf16.mxu1 %v1709_v17 }
 0x20f   :  { %v654_v34 = vpop.f32.mrb[20].mxu0  ;;  %v695_v3 = vpop.f32.mrb[20].mxu1 }
 0x210   :  { %v702_v56 = vadd.f32 %v654_v34, %v1882_v1  ;;  %v704_v4 = vadd.f32 %v695_v3, %v1887_v7  ;;  %v656_v12 = vpop.f32.mrb[21].mxu0  ;;  %v697_v15 = vpop.f32.mrb[21].mxu1 }
 0x211   :  { %v703_v57 = vadd.f32 %v656_v12, %v1884_v6  ;;  %v705_v58 = vadd.f32 %v697_v15, %v1890_v9  ;;  %v658_v59 = vpop.f32.mrb[22].mxu0  ;;  %v699_v60 = vpop.f32.mrb[22].mxu1 }
 0x212   :  { %v706_v61 = vmul.f32 0.5, %v702_v56  ;;  %v659_v63 = vpop.f32.mrb[23].mxu0  ;;  %v700_v0 = vpop.f32.mrb[23].mxu1  ;;  %v708_v10 = vmul.f32 0.5, %v704_v4 }
 0x213   :  { %v707_v5 = vmul.f32 0.5, %v703_v57 }
 0x214   :  { %1527 = vtanh.f32 %v706_v61  ;;  %v2289_v61 = vld [vmem:[#allocation10_spill] sm:$0xff] }
 0x215   :  { %1529 = vtanh.f32 %v707_v5 }
 0x216   :  { %1531 = vtanh.f32 %v705_v58 }
 0x217   :  { %1533 = vtanh.f32 %v708_v10 }
 0x21e   :  { %v1528_v62 = vpop.eup %1527 }
 0x21f   :  { %v712_v1 = vmul.f32 0.5, %v1528_v62  ;;  %v1530_v54 = vpop.eup %1529 }
 0x220   :  { %v713_v53 = vmul.f32 0.5, %v1530_v54  ;;  %v1532_v16 = vpop.eup %1531 }
 0x221   :  { %v715_v7 = vadd.f32 0.5, %v712_v1  ;;  %v1534_v25 = vpop.eup %1533 }
 0x222   :  { %v716_v6 = vadd.f32 0.5, %v713_v53  ;;  %v714_v52 = vmul.f32 0.5, %v1534_v25 }
 0x223   :  { %v720_v2 = vmul.f32 %v1532_v16, %v715_v7 }
 0x224   :  { %v719_v9 = vmul.f32 %v716_v6, %v1963_v55  ;;  %v717_v34 = vadd.f32 0.5, %v714_v52 }
 0x226   :  { %v2008_v51 = vadd.f32 %v720_v2, %v719_v9 }
 0x228   :  { %1535 = vtanh.f32 %v2008_v51 }
 0x232   :  { %v1536_v3 = vpop.eup %1535 }
 0x233   :  { %v723_v56 = vmul.f32 %v1536_v3, %v717_v34 }
 0x235   :  { %v724_v4 = vpack.c.bf16 %v723_v56, %v723_v56 }
 0x237   :  { %1452 = vst [vmem:[%s2264_s4 + $0x4] sm:$0xf] %v724_v4  ;;  %765 = vmatmul.mubr.bf16.vlgmr.msra.gmra.mrb[24].mxu0 %v724_v4  ;;  %806 = vmatmul.mubr.bf16.vlgmr.msra.gmra.mrb[24].mxu1 %v724_v4 }
 0x238   :  { %845 = vmatpush1.bf16.msra.mxu0 %v1711_v18  ;;  %886 = vmatpush1.bf16.msra.mxu1 %v1716_v20 }
 0x239   :  { %846 = vmatprep.subr.bf16.mxu0 %v1714_v19  ;;  %887 = vmatprep.subr.bf16.mxu1 %v1720_v21 }
 0x23a   :  { %876 = vmatprep.mubr.bf16.mxu0 %v2288_v8  ;;  %917 = vmatprep.mubr.bf16.mxu1 %v2288_v8 }
 0x23c   :  { %847 = vmatpush1.bf16.msra.mxu0 %v1723_v22  ;;  %888 = vmatpush1.bf16.msra.mxu1 %v1731_v24 }
 0x23d   :  { %848 = vmatprep.subr.bf16.mxu0 %v1728_v23  ;;  %889 = vmatprep.subr.bf16.mxu1 %v1738_v26 }
 0x240   :  { %849 = vmatpush1.bf16.msra.mxu0 %v1741_v27  ;;  %890 = vmatpush1.bf16.msra.mxu1 %v1747_v29 }
 0x241   :  { %850 = vmatprep.subr.bf16.mxu0 %v1744_v28  ;;  %891 = vmatprep.subr.bf16.mxu1 %v1751_v30 }
 0x244   :  { %851 = vmatpush1.bf16.msra.mxu0 %v1754_v31  ;;  %892 = vmatpush1.bf16.msra.mxu1 %v1762_v33 }
 0x245   :  { %852 = vmatprep.subr.bf16.mxu0 %v1759_v32  ;;  %893 = vmatprep.subr.bf16.mxu1 %v1769_v35 }
 0x248   :  { %853 = vmatpush1.bf16.msra.mxu0 %v1772_v36  ;;  %894 = vmatpush1.bf16.msra.mxu1 %v1778_v38 }
 0x249   :  { %854 = vmatprep.subr.bf16.mxu0 %v1775_v37  ;;  %895 = vmatprep.subr.bf16.mxu1 %v1782_v39 }
 0x24c   :  { %855 = vmatpush1.bf16.msra.mxu0 %v1785_v40  ;;  %896 = vmatpush1.bf16.msra.mxu1 %v1793_v42 }
 0x24d   :  { %856 = vmatprep.subr.bf16.mxu0 %v1790_v41  ;;  %897 = vmatprep.subr.bf16.mxu1 %v1800_v44 }
 0x250   :  { %857 = vmatpush1.bf16.msra.mxu0 %v1803_v45  ;;  %898 = vmatpush1.bf16.msra.mxu1 %v1809_v47 }
 0x251   :  { %858 = vmatprep.subr.bf16.mxu0 %v1806_v46  ;;  %899 = vmatprep.subr.bf16.mxu1 %v1813_v48 }
 0x254   :  { %859 = vmatpush1.bf16.msra.mxu0 %v1816_v49  ;;  %900 = vmatpush1.bf16.msra.mxu1 %v1822_v50 }
 0x255   :  { %956 = vmatprep.subr.bf16.mxu0 %v1704_v13  ;;  %997 = vmatprep.subr.bf16.mxu1 %v1709_v17 }
 0x30a   :  { %v766_v55 = vpop.f32.mrb[24].mxu0  ;;  %v807_v12 = vpop.f32.mrb[24].mxu1 }
 0x30b   :  { %v814_v15 = vadd.f32 %v766_v55, %v1893_v11  ;;  %v816_v57 = vadd.f32 %v807_v12, %v1901_v43  ;;  %v768_v58 = vpop.f32.mrb[25].mxu0  ;;  %v809_v59 = vpop.f32.mrb[25].mxu1 }
 0x30c   :  { %v815_v60 = vadd.f32 %v768_v58, %v1895_v14  ;;  %v817_v63 = vadd.f32 %v809_v59, %v2289_v61  ;;  %v770_v0 = vpop.f32.mrb[26].mxu0  ;;  %v811_v5 = vpop.f32.mrb[26].mxu1  ;;  %v2291_v59 = vld [vmem:[#allocation11_spill] sm:$0xff] }
 0x30d   :  { %v818_v10 = vmul.f32 0.5, %v814_v15  ;;  %v771_v62 = vpop.f32.mrb[27].mxu0  ;;  %v812_v1 = vpop.f32.mrb[27].mxu1  ;;  %v820_v7 = vmul.f32 0.5, %v816_v57  ;;  %v2290_v57 = vld [vmem:[#allocation8_spill] sm:$0xff]  ;;  %v2292_v0 = vld [vmem:[#allocation9_spill] sm:$0xff] }
 0x30e   :  { %v819_v54 = vmul.f32 0.5, %v815_v60 }
 0x30f   :  { %1537 = vtanh.f32 %v818_v10  ;;  %v2293_v10 = vld [vmem:[#allocation12_spill] sm:$0xff] }
 0x310   :  { %1539 = vtanh.f32 %v819_v54 }
 0x311   :  { %1541 = vtanh.f32 %v817_v63 }
 0x312   :  { %1543 = vtanh.f32 %v820_v7 }
 0x319   :  { %v1538_v53 = vpop.eup %1537 }
 0x31a   :  { %v824_v11 = vmul.f32 0.5, %v1538_v53  ;;  %v1540_v16 = vpop.eup %1539 }
 0x31b   :  { %v825_v6 = vmul.f32 0.5, %v1540_v16  ;;  %v1542_v2 = vpop.eup %1541 }
 0x31c   :  { %v827_v43 = vadd.f32 0.5, %v824_v11  ;;  %v1544_v34 = vpop.eup %1543 }
 0x31d   :  { %v828_v14 = vadd.f32 0.5, %v825_v6  ;;  %v826_v3 = vmul.f32 0.5, %v1544_v34 }
 0x31e   :  { %v832_v9 = vmul.f32 %v1542_v2, %v827_v43 }
 0x31f   :  { %v831_v25 = vmul.f32 %v828_v14, %v2008_v51  ;;  %v829_v56 = vadd.f32 0.5, %v826_v3 }
 0x321   :  { %v2053_v52 = vadd.f32 %v832_v9, %v831_v25 }
 0x323   :  { %1545 = vtanh.f32 %v2053_v52 }
 0x32d   :  { %v1546_v4 = vpop.eup %1545 }
 0x32e   :  { %v835_v55 = vmul.f32 %v1546_v4, %v829_v56 }
 0x330   :  { %v836_v12 = vpack.c.bf16 %v835_v55, %v835_v55 }
 0x332   :  { %1453 = vst [vmem:[%s2264_s4 + $0x8] sm:$0xf] %v836_v12  ;;  %877 = vmatmul.mubr.bf16.vlgmr.msra.gmra.mrb[28].mxu0 %v836_v12  ;;  %918 = vmatmul.mubr.bf16.vlgmr.msra.gmra.mrb[28].mxu1 %v836_v12 }
 0x333   :  { %957 = vmatpush1.bf16.msra.mxu0 %v1711_v18  ;;  %998 = vmatpush1.bf16.msra.mxu1 %v1716_v20 }
 0x334   :  { %958 = vmatprep.subr.bf16.mxu0 %v1714_v19  ;;  %999 = vmatprep.subr.bf16.mxu1 %v1720_v21 }
 0x335   :  { %988 = vmatprep.mubr.bf16.mxu0 %v2288_v8  ;;  %1029 = vmatprep.mubr.bf16.mxu1 %v2288_v8 }
 0x337   :  { %959 = vmatpush1.bf16.msra.mxu0 %v1723_v22  ;;  %1000 = vmatpush1.bf16.msra.mxu1 %v1731_v24 }
 0x338   :  { %960 = vmatprep.subr.bf16.mxu0 %v1728_v23  ;;  %1001 = vmatprep.subr.bf16.mxu1 %v1738_v26 }
 0x33b   :  { %961 = vmatpush1.bf16.msra.mxu0 %v1741_v27  ;;  %1002 = vmatpush1.bf16.msra.mxu1 %v1747_v29 }
 0x33c   :  { %962 = vmatprep.subr.bf16.mxu0 %v1744_v28  ;;  %1003 = vmatprep.subr.bf16.mxu1 %v1751_v30 }
 0x33f   :  { %963 = vmatpush1.bf16.msra.mxu0 %v1754_v31  ;;  %1004 = vmatpush1.bf16.msra.mxu1 %v1762_v33 }
 0x340   :  { %964 = vmatprep.subr.bf16.mxu0 %v1759_v32  ;;  %1005 = vmatprep.subr.bf16.mxu1 %v1769_v35 }
 0x343   :  { %965 = vmatpush1.bf16.msra.mxu0 %v1772_v36  ;;  %1006 = vmatpush1.bf16.msra.mxu1 %v1778_v38 }
 0x344   :  { %966 = vmatprep.subr.bf16.mxu0 %v1775_v37  ;;  %1007 = vmatprep.subr.bf16.mxu1 %v1782_v39 }
 0x347   :  { %967 = vmatpush1.bf16.msra.mxu0 %v1785_v40  ;;  %1008 = vmatpush1.bf16.msra.mxu1 %v1793_v42 }
 0x348   :  { %968 = vmatprep.subr.bf16.mxu0 %v1790_v41  ;;  %1009 = vmatprep.subr.bf16.mxu1 %v1800_v44 }
 0x34b   :  { %969 = vmatpush1.bf16.msra.mxu0 %v1803_v45  ;;  %1010 = vmatpush1.bf16.msra.mxu1 %v1809_v47 }
 0x34c   :  { %970 = vmatprep.subr.bf16.mxu0 %v1806_v46  ;;  %1011 = vmatprep.subr.bf16.mxu1 %v1813_v48 }
 0x34f   :  { %971 = vmatpush1.bf16.msra.mxu0 %v1816_v49  ;;  %1012 = vmatpush1.bf16.msra.mxu1 %v1822_v50 }
 0x350   :  { %1068 = vmatprep.subr.bf16.mxu0 %v1704_v13  ;;  %1109 = vmatprep.subr.bf16.mxu1 %v1709_v17 }
 0x405   :  { %v878_v51 = vpop.f32.mrb[28].mxu0  ;;  %v919_v15 = vpop.f32.mrb[28].mxu1 }
 0x406   :  { %v926_v58 = vadd.f32 %v878_v51, %v2290_v57  ;;  %v928_v60 = vadd.f32 %v919_v15, %v2291_v59  ;;  %v880_v61 = vpop.f32.mrb[29].mxu0  ;;  %v921_v63 = vpop.f32.mrb[29].mxu1 }
 0x407   :  { %v927_v5 = vadd.f32 %v880_v61, %v2292_v0  ;;  %v929_v62 = vadd.f32 %v921_v63, %v2293_v10  ;;  %v882_v1 = vpop.f32.mrb[30].mxu0  ;;  %v923_v54 = vpop.f32.mrb[30].mxu1 }
 0x408   :  { %v930_v7 = vmul.f32 0.5, %v926_v58  ;;  %v883_v53 = vpop.f32.mrb[31].mxu0  ;;  %v924_v11 = vpop.f32.mrb[31].mxu1  ;;  %v932_v17 = vmul.f32 0.5, %v928_v60 }
 0x409   :  { %v931_v13 = vmul.f32 0.5, %v927_v5 }
 0x40a   :  { %1547 = vtanh.f32 %v930_v7 }
 0x40b   :  { %1549 = vtanh.f32 %v931_v13 }
 0x40c   :  { %1551 = vtanh.f32 %v929_v62 }
 0x40d   :  { %1553 = vtanh.f32 %v932_v17 }
 0x414   :  { %v1548_v16 = vpop.eup %1547 }
 0x415   :  { %v936_v43 = vmul.f32 0.5, %v1548_v16  ;;  %v1550_v6 = vpop.eup %1549 }
 0x416   :  { %v937_v14 = vmul.f32 0.5, %v1550_v6  ;;  %v1552_v9 = vpop.eup %1551 }
 0x417   :  { %v939_v2 = vadd.f32 0.5, %v936_v43  ;;  %v1554_v4 = vpop.eup %1553 }
 0x418   :  { %v940_v25 = vadd.f32 0.5, %v937_v14  ;;  %v938_v55 = vmul.f32 0.5, %v1554_v4  ;;  %v2170_v4 = vld [vmem:[#allocation5 + $0x28] ss:$16 sps:$4 sm:$0xff]  }
 0x419   :  { %v944_v34 = vmul.f32 %v1552_v9, %v939_v2  ;;  %v2153_v9 = vld [vmem:[#allocation5] ss:$16 sps:$4 sm:$0xff]  }
 0x41a   :  { %v943_v3 = vmul.f32 %v940_v25, %v2053_v52  ;;  %v941_v12 = vadd.f32 0.5, %v938_v55  ;;  %v2156_v25 = vld [vmem:[#allocation5 + $0x8] ss:$16 sps:$4 sm:$0xff]   ;;  %v2173_v55 = vld [vmem:[#allocation5 + $0x44] ss:$16 sps:$4 sm:$0xff]  }
 0x41c   :  { %v2098_v56 = vadd.f32 %v944_v34, %v943_v3  ;;  %v2159_v34 = vld [vmem:[#allocation5 + $0x24] ss:$16 sps:$4 sm:$0xff]   ;;  %v2162_v3 = vld [vmem:[#allocation5 + $0x2c] ss:$16 sps:$4 sm:$0xff]  }
 0x41e   :  { %1555 = vtanh.f32 %v2098_v56 }
 0x428   :  { %v1556_v51 = vpop.eup %1555 }
 0x429   :  { %v947_v15 = vmul.f32 %v1556_v51, %v941_v12  ;;  %v2176_v12 = vld [vmem:[#allocation5 + $0x4c] ss:$16 sps:$4 sm:$0xff]   ;;  %v2179_v51 = vld [vmem:[#allocation5 + $0x40] ss:$16 sps:$4 sm:$0xff]  }
 0x42b   :  { %v948_v57 = vpack.c.bf16 %v947_v15, %v947_v15  ;;  %v2182_v15 = vld [vmem:[#allocation5 + $0x48] ss:$16 sps:$4 sm:$0xff]  }
 0x42d   :  { %1454 = vst [vmem:[%s2264_s4 + $0xc] sm:$0xf] %v948_v57  ;;  %989 = vmatmul.mubr.bf16.vlgmr.msra.gmra.mrb[32].mxu0 %v948_v57  ;;  %1030 = vmatmul.mubr.bf16.vlgmr.msra.gmra.mrb[32].mxu1 %v948_v57  ;;  %v2185_v57 = vld [vmem:[#allocation5 + $0x64] ss:$16 sps:$4 sm:$0xff]  }
 0x42e   :  { %1069 = vmatpush1.bf16.msra.mxu0 %v1711_v18  ;;  %1110 = vmatpush1.bf16.msra.mxu1 %v1716_v20  ;;  %v2136_v18 = vld [vmem:[#allocation5 + $0x4] ss:$16 sps:$4 sm:$0xff]  }
 0x42f   :  { %1070 = vmatprep.subr.bf16.mxu0 %v1714_v19  ;;  %1111 = vmatprep.subr.bf16.mxu1 %v1720_v21  ;;  %v2139_v19 = vld [vmem:[#allocation5 + $0xc] ss:$16 sps:$4 sm:$0xff]  }
 0x430   :  { %1100 = vmatprep.mubr.bf16.mxu0 %v2288_v8  ;;  %1141 = vmatprep.mubr.bf16.mxu1 %v2288_v8 }
 0x432   :  { %1071 = vmatpush1.bf16.msra.mxu0 %v1723_v22  ;;  %1112 = vmatpush1.bf16.msra.mxu1 %v1731_v24  ;;  %v2294_v22 = vld [vmem:[#allocation13_spill] sm:$0xff]  ;;  %v2295_v24 = vld [vmem:[#allocation16_spill] sm:$0xff] }
 0x433   :  { %1072 = vmatprep.subr.bf16.mxu0 %v1728_v23  ;;  %1113 = vmatprep.subr.bf16.mxu1 %v1738_v26 }
 0x436   :  { %1073 = vmatpush1.bf16.msra.mxu0 %v1741_v27  ;;  %1114 = vmatpush1.bf16.msra.mxu1 %v1747_v29  ;;  %v2296_v29 = vld [vmem:[#allocation14_spill] sm:$0xff] }
 0x437   :  { %1074 = vmatprep.subr.bf16.mxu0 %v1744_v28  ;;  %1115 = vmatprep.subr.bf16.mxu1 %v1751_v30 }
 0x43a   :  { %1075 = vmatpush1.bf16.msra.mxu0 %v1754_v31  ;;  %1116 = vmatpush1.bf16.msra.mxu1 %v1762_v33  ;;  %v2297_v31 = vld [vmem:[#allocation18_spill] sm:$0xff] }
 0x43b   :  { %1076 = vmatprep.subr.bf16.mxu0 %v1759_v32  ;;  %1117 = vmatprep.subr.bf16.mxu1 %v1769_v35 }
 0x43e   :  { %1077 = vmatpush1.bf16.msra.mxu0 %v1772_v36  ;;  %1118 = vmatpush1.bf16.msra.mxu1 %v1778_v38 }
 0x43f   :  { %1078 = vmatprep.subr.bf16.mxu0 %v1775_v37  ;;  %1119 = vmatprep.subr.bf16.mxu1 %v1782_v39 }
 0x442   :  { %1079 = vmatpush1.bf16.msra.mxu0 %v1785_v40  ;;  %1120 = vmatpush1.bf16.msra.mxu1 %v1793_v42 }
 0x443   :  { %1080 = vmatprep.subr.bf16.mxu0 %v1790_v41  ;;  %1121 = vmatprep.subr.bf16.mxu1 %v1800_v44 }
 0x446   :  { %1081 = vmatpush1.bf16.msra.mxu0 %v1803_v45  ;;  %1122 = vmatpush1.bf16.msra.mxu1 %v1809_v47 }
 0x447   :  { %1082 = vmatprep.subr.bf16.mxu0 %v1806_v46  ;;  %1123 = vmatprep.subr.bf16.mxu1 %v1813_v48 }
 0x44a   :  { %1083 = vmatpush1.bf16.msra.mxu0 %v1816_v49  ;;  %1124 = vmatpush1.bf16.msra.mxu1 %v1822_v50 }
 0x44b   :  { %1180 = vmatprep.subr.bf16.mxu0 %v2136_v18  ;;  %1221 = vmatprep.subr.bf16.mxu1 %v2139_v19 }
 0x500   :  { %v990_v20 = vpop.f32.mrb[32].mxu0  ;;  %v1031_v21 = vpop.f32.mrb[32].mxu1 }
 0x501   :  { %v1038_v23 = vadd.f32 %v990_v20, %v2294_v22  ;;  %v1040_v26 = vadd.f32 %v1031_v21, %v2295_v24  ;;  %v992_v27 = vpop.f32.mrb[33].mxu0  ;;  %v1033_v28 = vpop.f32.mrb[33].mxu1  ;;  %v2188_v20 = vld [vmem:[#allocation5 + $0x6c] ss:$16 sps:$4 sm:$0xff]   ;;  %v2191_v21 = vld [vmem:[#allocation5 + $0x60] ss:$16 sps:$4 sm:$0xff]  }
 0x502   :  { %v1039_v30 = vadd.f32 %v992_v27, %v2296_v29  ;;  %v1041_v32 = vadd.f32 %v1033_v28, %v2297_v31  ;;  %v994_v33 = vpop.f32.mrb[34].mxu0  ;;  %v1035_v52 = vpop.f32.mrb[34].mxu1  ;;  %v2194_v22 = vld [vmem:[#allocation5 + $0x68] ss:$16 sps:$4 sm:$0xff]  }
 0x503   :  { %v1042_v58 = vmul.f32 0.5, %v1038_v23  ;;  %v995_v59 = vpop.f32.mrb[35].mxu0  ;;  %v1036_v60 = vpop.f32.mrb[35].mxu1  ;;  %v1044_v63 = vmul.f32 0.5, %v1040_v26  ;;  %v2197_v23 = vld [vmem:[#allocation5 + $0x84] ss:$16 sps:$4 sm:$0xff]  }
 0x504   :  { %v1043_v61 = vmul.f32 0.5, %v1039_v30 }
 0x505   :  { %1557 = vtanh.f32 %v1042_v58 }
 0x506   :  { %1559 = vtanh.f32 %v1043_v61 }
 0x507   :  { %1561 = vtanh.f32 %v1041_v32 }
 0x508   :  { %1563 = vtanh.f32 %v1044_v63 }
 0x50f   :  { %v1558_v0 = vpop.eup %1557 }
 0x510   :  { %v1048_v5 = vmul.f32 0.5, %v1558_v0  ;;  %v1560_v10 = vpop.eup %1559 }
 0x511   :  { %v1049_v1 = vmul.f32 0.5, %v1560_v10  ;;  %v1562_v54 = vpop.eup %1561 }
 0x512   :  { %v1051_v62 = vadd.f32 0.5, %v1048_v5  ;;  %v1564_v17 = vpop.eup %1563 }
 0x513   :  { %v1052_v7 = vadd.f32 0.5, %v1049_v1  ;;  %v1050_v16 = vmul.f32 0.5, %v1564_v17  ;;  %v1616_v1 = vld [vmem:[#allocation5 + $0x88] ss:$16 sps:$4 sm:$0xff]   ;;  %v1622_v17 = vld [vmem:[#allocation5 + $0xcc] ss:$16 sps:$4 sm:$0xff]  }
 0x514   :  { %v1056_v53 = vmul.f32 %v1562_v54, %v1051_v62  ;;  %v1615_v62 = vld [vmem:[#allocation5 + $0x80] ss:$16 sps:$4 sm:$0xff]   ;;  %v1617_v54 = vld [vmem:[#allocation5 + $0xa4] ss:$16 sps:$4 sm:$0xff]  }
 0x515   :  { %v1055_v11 = vmul.f32 %v1052_v7, %v2098_v56  ;;  %v1053_v43 = vadd.f32 0.5, %v1050_v16  ;;  %v2167_v56 = vld [vmem:[#allocation5 + $0x20] ss:$16 sps:$4 sm:$0xff]   ;;  %v1618_v7 = vld [vmem:[#allocation5 + $0xac] ss:$16 sps:$4 sm:$0xff]  }
 0x516   :  { %v1623_v16 = vld [vmem:[#allocation5 + $0xc0] ss:$16 sps:$4 sm:$0xff]  }
 0x517   :  { %v2147_v13 = vadd.f32 %v1056_v53, %v1055_v11  ;;  %v1619_v53 = vld [vmem:[#allocation5 + $0xa0] ss:$16 sps:$4 sm:$0xff]   ;;  %v1620_v11 = vld [vmem:[#allocation5 + $0xa8] ss:$16 sps:$4 sm:$0xff]  }
 0x519   :  { %1565 = vtanh.f32 %v2147_v13 }
 0x523   :  { %v1566_v6 = vpop.eup %1565 }
 0x524   :  { %v1059_v2 = vmul.f32 %v1566_v6, %v1053_v43  ;;  %v1624_v43 = vld [vmem:[#allocation5 + $0xc8] ss:$16 sps:$4 sm:$0xff]   ;;  %v1625_v6 = vld [vmem:[#allocation5 + $0xe4] ss:$16 sps:$4 sm:$0xff]  }
 0x526   :  { %v1060_v14 = vpack.c.bf16 %v1059_v2, %v1059_v2  ;;  %v1626_v2 = vld [vmem:[#allocation5 + $0xec] ss:$16 sps:$4 sm:$0xff]  }
 0x528   :  { %1455 = vst [vmem:[%s2264_s4 + $0x10] sm:$0xf] %v1060_v14  ;;  %1101 = vmatmul.mubr.bf16.vlgmr.msra.gmra.mrb[36].mxu0 %v1060_v14  ;;  %1142 = vmatmul.mubr.bf16.vlgmr.msra.gmra.mrb[36].mxu1 %v1060_v14  ;;  %v1627_v14 = vld [vmem:[#allocation5 + $0xe0] ss:$16 sps:$4 sm:$0xff]  }
 0x529   :  { %1181 = vmatpush1.bf16.msra.mxu0 %v2153_v9  ;;  %1222 = vmatpush1.bf16.msra.mxu1 %v2156_v25 }
 0x52a   :  { %1182 = vmatprep.subr.bf16.mxu0 %v2159_v34  ;;  %1223 = vmatprep.subr.bf16.mxu1 %v2162_v3 }
 0x52b   :  { %1212 = vmatprep.mubr.bf16.mxu0 %v2288_v8  ;;  %1253 = vmatprep.mubr.bf16.mxu1 %v2288_v8 }
 0x52d   :  { %1183 = vmatpush1.bf16.msra.mxu0 %v2167_v56  ;;  %1224 = vmatpush1.bf16.msra.mxu1 %v2170_v4 }
 0x52e   :  { %1184 = vmatprep.subr.bf16.mxu0 %v2173_v55  ;;  %1225 = vmatprep.subr.bf16.mxu1 %v2176_v12 }
 0x531   :  { %1185 = vmatpush1.bf16.msra.mxu0 %v2179_v51  ;;  %1226 = vmatpush1.bf16.msra.mxu1 %v2182_v15 }
 0x532   :  { %1186 = vmatprep.subr.bf16.mxu0 %v2185_v57  ;;  %1227 = vmatprep.subr.bf16.mxu1 %v2188_v20 }
 0x535   :  { %1187 = vmatpush1.bf16.msra.mxu0 %v2191_v21  ;;  %1228 = vmatpush1.bf16.msra.mxu1 %v2194_v22 }
 0x536   :  { %1188 = vmatprep.subr.bf16.mxu0 %v2197_v23  ;;  %1229 = vmatprep.subr.bf16.mxu1 %v1769_v35 }
 0x539   :  { %1189 = vmatpush1.bf16.msra.mxu0 %v1772_v36  ;;  %1230 = vmatpush1.bf16.msra.mxu1 %v1778_v38 }
 0x53a   :  { %1190 = vmatprep.subr.bf16.mxu0 %v1775_v37  ;;  %1231 = vmatprep.subr.bf16.mxu1 %v1782_v39  ;;  %v2298_v37 = vld [vmem:[#allocation15_spill] sm:$0xff] }
 0x53b   :  { %v2299_v39 = vld [vmem:[#allocation19_spill] sm:$0xff] }
 0x53d   :  { %1191 = vmatpush1.bf16.msra.mxu0 %v1785_v40  ;;  %1232 = vmatpush1.bf16.msra.mxu1 %v1793_v42 }
 0x53e   :  { %1192 = vmatprep.subr.bf16.mxu0 %v1790_v41  ;;  %1233 = vmatprep.subr.bf16.mxu1 %v1800_v44  ;;  %v2300_v44 = vld [vmem:[#allocation17_spill] sm:$0xff] }
 0x541   :  { %1193 = vmatpush1.bf16.msra.mxu0 %v1803_v45  ;;  %1234 = vmatpush1.bf16.msra.mxu1 %v1809_v47 }
 0x542   :  { %1194 = vmatprep.subr.bf16.mxu0 %v1806_v46  ;;  %1235 = vmatprep.subr.bf16.mxu1 %v1813_v48  ;;  %v2301_v46 = vld [vmem:[#allocation20_spill] sm:$0xff] }
 0x545   :  { %1195 = vmatpush1.bf16.msra.mxu0 %v1816_v49  ;;  %1236 = vmatpush1.bf16.msra.mxu1 %v1822_v50 }
 0x546   :  { %1292 = vmatprep.subr.bf16.mxu0 %v2136_v18  ;;  %1333 = vmatprep.subr.bf16.mxu1 %v2139_v19 }
 0x5fb   :  { %v1102_v35 = vpop.f32.mrb[36].mxu0  ;;  %v1143_v36 = vpop.f32.mrb[36].mxu1 }
 0x5fc   :  { %v1150_v38 = vadd.f32 %v1102_v35, %v2298_v37  ;;  %v1152_v40 = vadd.f32 %v1143_v36, %v2299_v39  ;;  %v1104_v41 = vpop.f32.mrb[37].mxu0  ;;  %v1145_v42 = vpop.f32.mrb[37].mxu1 }
 0x5fd   :  { %v1151_v45 = vadd.f32 %v1104_v41, %v2300_v44  ;;  %v1153_v47 = vadd.f32 %v1145_v42, %v2301_v46  ;;  %v1106_v48 = vpop.f32.mrb[38].mxu0  ;;  %v1147_v49 = vpop.f32.mrb[38].mxu1 }
 0x5fe   :  { %v1154_v24 = vmul.f32 0.5, %v1150_v38  ;;  %v1107_v50 = vpop.f32.mrb[39].mxu0  ;;  %v1148_v26 = vpop.f32.mrb[39].mxu1  ;;  %v1156_v19 = vmul.f32 0.5, %v1152_v40 }
 0x5ff   :  { %v1155_v18 = vmul.f32 0.5, %v1151_v45 }
 0x600   :  { %1567 = vtanh.f32 %v1154_v24 }
 0x601   :  { %1569 = vtanh.f32 %v1155_v18 }
 0x602   :  { %1571 = vtanh.f32 %v1153_v47 }
 0x603   :  { %1573 = vtanh.f32 %v1156_v19 }
 0x60a   :  { %v1568_v27 = vpop.eup %1567 }
 0x60b   :  { %v1160_v28 = vmul.f32 0.5, %v1568_v27  ;;  %v1570_v29 = vpop.eup %1569 }
 0x60c   :  { %v1161_v31 = vmul.f32 0.5, %v1570_v29  ;;  %v1572_v32 = vpop.eup %1571 }
 0x60d   :  { %v1163_v30 = vadd.f32 0.5, %v1160_v28  ;;  %v1574_v60 = vpop.eup %1573 }
 0x60e   :  { %v1164_v33 = vadd.f32 0.5, %v1161_v31  ;;  %v1162_v61 = vmul.f32 0.5, %v1574_v60  ;;  %v2306_v31 = vld [vmem:[#allocation23_spill] sm:$0xff]  ;;  %v2308_v60 = vld [vmem:[#allocation25_spill] sm:$0xff] }
 0x60f   :  { %v1168_v52 = vmul.f32 %v1572_v32, %v1163_v30 }
 0x610   :  { %v1167_v58 = vmul.f32 %v1164_v33, %v2147_v13  ;;  %v1165_v63 = vadd.f32 0.5, %v1162_v61  ;;  %v1621_v13 = vld [vmem:[#allocation5 + $0xc4] ss:$16 sps:$4 sm:$0xff]   ;;  %v2307_v33 = vld [vmem:[#allocation27_spill] sm:$0xff] }
 0x612   :  { %v2222_v59 = vadd.f32 %v1168_v52, %v1167_v58 }
 0x614   :  { %1575 = vtanh.f32 %v2222_v59 }
 0x61e   :  { %v1576_v0 = vpop.eup %1575 }
 0x61f   :  { %v1171_v5 = vmul.f32 %v1576_v0, %v1165_v63  ;;  %v2309_v63 = vld [vmem:[#allocation28_spill] sm:$0xff] }
 0x621   :  { %v1172_v10 = vpack.c.bf16 %v1171_v5, %v1171_v5 }
 0x623   :  { %1456 = vst [vmem:[%s2264_s4 + $0x14] sm:$0xf] %v1172_v10  ;;  %1213 = vmatmul.mubr.bf16.vlgmr.msra.gmra.mrb[40].mxu0 %v1172_v10  ;;  %1254 = vmatmul.mubr.bf16.vlgmr.msra.gmra.mrb[40].mxu1 %v1172_v10 }
 0x624   :  { %1293 = vmatpush1.bf16.msra.mxu0 %v2153_v9  ;;  %1334 = vmatpush1.bf16.msra.mxu1 %v2156_v25  ;;  %v1628_v9 = vld [vmem:[#allocation5 + $0xe8] ss:$16 sps:$4 sm:$0xff]  }
 0x625   :  { %1294 = vmatprep.subr.bf16.mxu0 %v2159_v34  ;;  %1335 = vmatprep.subr.bf16.mxu1 %v2162_v3  ;;  %v2302_v3 = vld [vmem:[#allocation21_spill] sm:$0xff] }
 0x626   :  { %1324 = vmatprep.mubr.bf16.mxu0 %v2288_v8  ;;  %1365 = vmatprep.mubr.bf16.mxu1 %v2288_v8  ;;  %v1614_v8 = vld [vmem:[#allocation5 + $0x8c] ss:$16 sps:$4 sm:$0xff]  }
 0x628   :  { %1295 = vmatpush1.bf16.msra.mxu0 %v2167_v56  ;;  %1336 = vmatpush1.bf16.msra.mxu1 %v2170_v4  ;;  %v2303_v4 = vld [vmem:[#allocation24_spill] sm:$0xff] }
 0x629   :  { %1296 = vmatprep.subr.bf16.mxu0 %v2173_v55  ;;  %1337 = vmatprep.subr.bf16.mxu1 %v2176_v12 }
 0x62c   :  { %1297 = vmatpush1.bf16.msra.mxu0 %v2179_v51  ;;  %1338 = vmatpush1.bf16.msra.mxu1 %v2182_v15  ;;  %v2304_v15 = vld [vmem:[#allocation22_spill] sm:$0xff] }
 0x62d   :  { %1298 = vmatprep.subr.bf16.mxu0 %v2185_v57  ;;  %1339 = vmatprep.subr.bf16.mxu1 %v2188_v20  ;;  %v2305_v20 = vld [vmem:[#allocation26_spill] sm:$0xff] }
 0x630   :  { %1299 = vmatpush1.bf16.msra.mxu0 %v2191_v21  ;;  %1340 = vmatpush1.bf16.msra.mxu1 %v2194_v22 }
 0x631   :  { %1300 = vmatprep.subr.bf16.mxu0 %v2197_v23  ;;  %1341 = vmatprep.subr.bf16.mxu1 %v1614_v8 }
 0x634   :  { %1301 = vmatpush1.bf16.msra.mxu0 %v1615_v62  ;;  %1342 = vmatpush1.bf16.msra.mxu1 %v1616_v1 }
 0x635   :  { %1302 = vmatprep.subr.bf16.mxu0 %v1617_v54  ;;  %1343 = vmatprep.subr.bf16.mxu1 %v1618_v7 }
 0x638   :  { %1303 = vmatpush1.bf16.msra.mxu0 %v1619_v53  ;;  %1344 = vmatpush1.bf16.msra.mxu1 %v1620_v11 }
 0x639   :  { %1304 = vmatprep.subr.bf16.mxu0 %v1621_v13  ;;  %1345 = vmatprep.subr.bf16.mxu1 %v1622_v17 }
 0x63c   :  { %1305 = vmatpush1.bf16.msra.mxu0 %v1623_v16  ;;  %1346 = vmatpush1.bf16.msra.mxu1 %v1624_v43 }
 0x63d   :  { %1306 = vmatprep.subr.bf16.mxu0 %v1625_v6  ;;  %1347 = vmatprep.subr.bf16.mxu1 %v1626_v2 }
 0x640   :  { %1307 = vmatpush1.bf16.msra.mxu0 %v1627_v14  ;;  %1348 = vmatpush1.bf16.msra.mxu1 %v1628_v9 }
 0x6f6   :  { %v1214_v25 = vpop.f32.mrb[40].mxu0  ;;  %v1255_v34 = vpop.f32.mrb[40].mxu1 }
 0x6f7   :  { %v1262_v56 = vadd.f32 %v1214_v25, %v2302_v3  ;;  %v1264_v55 = vadd.f32 %v1255_v34, %v2303_v4  ;;  %v1216_v12 = vpop.f32.mrb[41].mxu0  ;;  %v1257_v51 = vpop.f32.mrb[41].mxu1 }
 0x6f8   :  { %v1263_v57 = vadd.f32 %v1216_v12, %v2304_v15  ;;  %v1265_v21 = vadd.f32 %v1257_v51, %v2305_v20  ;;  %v1218_v22 = vpop.f32.mrb[42].mxu0  ;;  %v1259_v23 = vpop.f32.mrb[42].mxu1 }
 0x6f9   :  { %v1266_v35 = vmul.f32 0.5, %v1262_v56  ;;  %v1219_v36 = vpop.f32.mrb[43].mxu0  ;;  %v1260_v37 = vpop.f32.mrb[43].mxu1  ;;  %v1268_v39 = vmul.f32 0.5, %v1264_v55 }
 0x6fa   :  { %v1267_v38 = vmul.f32 0.5, %v1263_v57 }
 0x6fb   :  { %1577 = vtanh.f32 %v1266_v35 }
 0x6fc   :  { %1579 = vtanh.f32 %v1267_v38 }
 0x6fd   :  { %1581 = vtanh.f32 %v1265_v21 }
 0x6fe   :  { %1583 = vtanh.f32 %v1268_v39 }
 0x705   :  { %v1578_v40 = vpop.eup %1577 }
 0x706   :  { %v1272_v41 = vmul.f32 0.5, %v1578_v40  ;;  %v1580_v42 = vpop.eup %1579 }
 0x707   :  { %v1273_v45 = vmul.f32 0.5, %v1580_v42  ;;  %v1582_v46 = vpop.eup %1581 }
 0x708   :  { %v1275_v44 = vadd.f32 0.5, %v1272_v41  ;;  %v1584_v50 = vpop.eup %1583 }
 0x709   :  { %v1276_v47 = vadd.f32 0.5, %v1273_v45  ;;  %v1274_v26 = vmul.f32 0.5, %v1584_v50 }
 0x70a   :  { %v1280_v48 = vmul.f32 %v1582_v46, %v1275_v44 }
 0x70b   :  { %v1279_v49 = vmul.f32 %v1276_v47, %v2222_v59  ;;  %v1277_v18 = vadd.f32 0.5, %v1274_v26 }
 0x70d   :  { %v1281_v24 = vadd.f32 %v1280_v48, %v1279_v49 }
 0x70f   :  { %1585 = vtanh.f32 %v1281_v24 }
 0x719   :  { %v1586_v19 = vpop.eup %1585 }
 0x71a   :  { %v1283_v27 = vmul.f32 %v1586_v19, %v1277_v18 }
 0x71c   :  { %v1284_v28 = vpack.c.bf16 %v1283_v27, %v1283_v27 }
 0x71e   :  { %1457 = vst [vmem:[%s2264_s4 + $0x18] sm:$0xf] %v1284_v28  ;;  %1325 = vmatmul.mubr.bf16.vlgmr.msra.gmra.mrb[44].mxu0 %v1284_v28  ;;  %1366 = vmatmul.mubr.bf16.vlgmr.msra.gmra.mrb[44].mxu1 %v1284_v28 }
 0x7f1   :  { %v1326_v29 = vpop.f32.mrb[44].mxu0  ;;  %v1367_v30 = vpop.f32.mrb[44].mxu1 }
 0x7f2   :  { %v1374_v32 = vadd.f32 %v1326_v29, %v2306_v31  ;;  %v1376_v52 = vadd.f32 %v1367_v30, %v2307_v33  ;;  %v1328_v58 = vpop.f32.mrb[45].mxu0  ;;  %v1369_v59 = vpop.f32.mrb[45].mxu1 }
 0x7f3   :  { %v1375_v61 = vadd.f32 %v1328_v58, %v2308_v60  ;;  %v1377_v0 = vadd.f32 %v1369_v59, %v2309_v63  ;;  %v1330_v5 = vpop.f32.mrb[46].mxu0  ;;  %v1371_v10 = vpop.f32.mrb[46].mxu1 }
 0x7f4   :  { %v1378_v8 = vmul.f32 0.5, %v1374_v32  ;;  %v1331_v62 = vpop.f32.mrb[47].mxu0  ;;  %v1372_v1 = vpop.f32.mrb[47].mxu1  ;;  %v1380_v7 = vmul.f32 0.5, %v1376_v52 }
 0x7f5   :  { %v1379_v54 = vmul.f32 0.5, %v1375_v61 }
 0x7f6   :  { %1587 = vtanh.f32 %v1378_v8 }
 0x7f7   :  { %1589 = vtanh.f32 %v1379_v54 }
 0x7f8   :  { %1591 = vtanh.f32 %v1377_v0 }
 0x7f9   :  { %1593 = vtanh.f32 %v1380_v7 }
 0x800   :  { %v1588_v53 = vpop.eup %1587 }
 0x801   :  { %v1384_v11 = vmul.f32 0.5, %v1588_v53  ;;  %v1590_v13 = vpop.eup %1589 }
 0x802   :  { %v1385_v16 = vmul.f32 0.5, %v1590_v13  ;;  %v1592_v43 = vpop.eup %1591 }
 0x803   :  { %v1387_v17 = vadd.f32 0.5, %v1384_v11  ;;  %v1594_v25 = vpop.eup %1593 }
 0x804   :  { %v1388_v6 = vadd.f32 0.5, %v1385_v16  ;;  %v1386_v34 = vmul.f32 0.5, %v1594_v25 }
 0x805   :  { %v1392_v2 = vmul.f32 %v1592_v43, %v1387_v17 }
 0x806   :  { %v1391_v14 = vmul.f32 %v1388_v6, %v1281_v24  ;;  %v1389_v3 = vadd.f32 0.5, %v1386_v34 }
 0x808   :  { %v1393_v9 = vadd.f32 %v1392_v2, %v1391_v14 }
 0x80a   :  { %1595 = vtanh.f32 %v1393_v9 }
 0x814   :  { %v1596_v56 = vpop.eup %1595 }
 0x815   :  { %v1395_v4 = vmul.f32 %v1596_v56, %v1389_v3 }
 0x817   :  { %v1396_v55 = vpack.c.bf16 %v1395_v4, %v1395_v4 }
 0x819   :  { %1458 = vst [vmem:[%s2264_s4 + $0x1c] sm:$0xf] %v1396_v55  ;;  %1399 = vst [vmem:[#allocation2] sm:$0xf] %v1396_v55 }
 0x81a   :  { %1405 = vsyncpa [#allocation6], 1 }

</bundles_post_ra>
